<compile_context>
chip_gen: v7x
topology: tpu7x:2x2x1
jax: 0.10.0
libtpu: 0.0.40
codegen_flags: <defaults>
</compile_context>

<pallas_src>
import math

import jax
import jax.numpy as jnp
from jax.experimental import pallas as pl
from jax.experimental.pallas import tpu as pltpu

SUBLANE = 8


# ----------------------------------------------------------------------------
# Fused Pallas kernel: all LSTM layers + final Linear in one invocation
# ----------------------------------------------------------------------------
def make_fused_lstm_fc_kernel(T, B, H, num_layers):
    G = 4 * H

    def kernel(*refs):
        # refs = [x_flat,
        #         (w_ih_bf16, w_hh_bf16, bias_f32) * num_layers,
        #         fc_w_bf16, fc_b_f32, out]
        x_ref = refs[0]
        layer_refs = refs[1:1 + 3 * num_layers]
        fcw_ref = refs[1 + 3 * num_layers]
        fcb_ref = refs[2 + 3 * num_layers]
        out_ref = refs[3 + 3 * num_layers]

        # Layer-0 input already flattened time-major to (T*B, F), bf16.
        x_flat = x_ref[...]

        h = None
        for layer in range(num_layers):
            # i/f/o columns of these weights (and of the bias) were pre-scaled
            # by 0.5 in the wrapper (sigmoid-via-tanh folding).
            w_ih = layer_refs[3 * layer][...]       # (Fin, 4H) bf16
            w_hh = layer_refs[3 * layer + 1][...]   # (H,   4H) bf16
            bias = layer_refs[3 * layer + 2][...]   # (1,   4H) f32

            # Batched input projection for ALL timesteps in one MXU op,
            # off the recurrence critical path; bias added once per layer.
            xg_all = jnp.dot(x_flat, w_ih,
                             preferred_element_type=jnp.float32) + bias

            h = jnp.zeros((B, H), jnp.float32)
            c = jnp.zeros((B, H), jnp.float32)
            new_seq = []
            # Fully-unrolled time loop: the only serial dependence per step is
            # one (B,H)x(H,4H) bf16 matmul plus the gate elementwise math.
            for t in range(T):
                gates = xg_all[t * B:(t + 1) * B] + jnp.dot(
                    h.astype(jnp.bfloat16), w_hh,
                    preferred_element_type=jnp.float32)          # (B, 4H) f32

                # Single EUP pass over the whole 128-lane gate vreg.  Because
                # the i/f/o pre-activations were halved via weight folding,
                # sigmoid(z) == 0.5*tanh(z/2) + 0.5 falls out of one tanh;
                # g is read straight from the tanh output.
                tg = jnp.tanh(gates)
                sg = 0.5 * tg + 0.5           # one full-width VPU affine
                # PyTorch gate order: input, forget, cell (g), output.
                i_g = sg[:, 0 * H:1 * H]
                f_g = sg[:, 1 * H:2 * H]
                g_g = tg[:, 2 * H:3 * H]
                o_g = sg[:, 3 * H:4 * H]

                c = f_g * c + i_g * g_g
                h = o_g * jnp.tanh(c)
                if layer < num_layers - 1:
                    new_seq.append(h)

            if layer < num_layers - 1:
                # Next layer's input: stack to (T*B, H) once (off the critical
                # path) so its input projection is again one batched matmul.
                x_flat = jnp.concatenate(new_seq, axis=0).astype(jnp.bfloat16)

        # Final Linear on the last timestep's hidden state, fused in-kernel.
        out_ref[...] = (
            jnp.dot(h.astype(jnp.bfloat16), fcw_ref[...],
                    preferred_element_type=jnp.float32)
            + fcb_ref[...]
        )

    return kernel


# ----------------------------------------------------------------------------
# Wrapper
# ----------------------------------------------------------------------------
def lstm_temperature_forward(x, params):
    """Equivalent of LSTM_Temperature.forward (eval mode)."""
    B, T = x.shape[0], x.shape[1]
    x = x.reshape(B, T, -1).astype(jnp.float32)       # x.view(B, T, -1)
    F = x.shape[-1]

    layers = params["lstm"]
    num_layers = len(layers)
    H = layers[0]["whh_t"].shape[0]
    G = 4 * H
    O = params["fc_w_t"].shape[1]

    # Pad the batch (sublane) dimension to a multiple of 8: every vreg already
    # pays full 8-sublane cost, so the padding is free and avoids
    # partial-sublane stores of the output.
    B_pad = max(SUBLANE, ((B + SUBLANE - 1) // SUBLANE) * SUBLANE)
    if B_pad != B:
        x = jnp.pad(x, ((0, B_pad - B), (0, 0), (0, 0)))

    # Time-major, flattened to (T*B_pad, F): layer-0 input projection becomes
    # a single matmul inside the kernel.
    x_flat = jnp.transpose(x, (1, 0, 2)).reshape(T * B_pad, F)
    x_flat = x_flat.astype(jnp.bfloat16)

    # Fold the sigmoid->tanh rewrite into the parameters: scale the i/f/o gate
    # columns (and bias entries) by 0.5 so the kernel needs only one tanh over
    # the full gate vreg.  The g columns stay unscaled.
    gate_scale = jnp.concatenate([
        jnp.full((H,), 0.5, jnp.float32),   # i
        jnp.full((H,), 0.5, jnp.float32),   # f
        jnp.ones((H,), jnp.float32),        # g
        jnp.full((H,), 0.5, jnp.float32),   # o
    ])

    # TODO(synk): inter-layer dropout in nn.LSTM is training-only; this
    # implements eval semantics (no dropout applied).
    inputs = [x_flat]
    for layer in layers:
        inputs += [
            (layer["wih_t"] * gate_scale).astype(jnp.bfloat16),   # (Fin, 4H)
            (layer["whh_t"] * gate_scale).astype(jnp.bfloat16),   # (H,   4H)
            (layer["bias"] * gate_scale).reshape(1, G).astype(jnp.float32),
        ]
    inputs += [params["fc_w_t"].astype(jnp.bfloat16),             # (H, O)
               params["fc_b"].reshape(1, O).astype(jnp.float32)]

    kernel = make_fused_lstm_fc_kernel(T, B_pad, H, num_layers)
    out = pl.pallas_call(
        kernel,
        out_shape=jax.ShapeDtypeStruct((B_pad, O), jnp.float32),
        # No grid: single invocation, everything resident in VMEM (~100 KB,
        # far under every generation's VMEM including v7x's 64 MiB).
        in_specs=[pl.BlockSpec(memory_space=pltpu.MemorySpace.VMEM)
                  for _ in inputs],
        out_specs=pl.BlockSpec(memory_space=pltpu.MemorySpace.VMEM),
    )(*inputs)
    return out[:B]


# ----------------------------------------------------------------------------
# Deterministic parameter init (PyTorch-style uniform ranges)
# ----------------------------------------------------------------------------
def init_params(key, lstm_layers, hidden_size, input_size):
    params = {"lstm": []}
    stdv = 1.0 / math.sqrt(hidden_size)
    for layer in range(lstm_layers):
        in_f = input_size if layer == 0 else hidden_size
        key, k1, k2, k3, k4 = jax.random.split(key, 5)
        w_ih = jax.random.uniform(k1, (4 * hidden_size, in_f),
                                  minval=-stdv, maxval=stdv, dtype=jnp.float32)
        w_hh = jax.random.uniform(k2, (4 * hidden_size, hidden_size),
                                  minval=-stdv, maxval=stdv, dtype=jnp.float32)
        b_ih = jax.random.uniform(k3, (4 * hidden_size,),
                                  minval=-stdv, maxval=stdv, dtype=jnp.float32)
        b_hh = jax.random.uniform(k4, (4 * hidden_size,),
                                  minval=-stdv, maxval=stdv, dtype=jnp.float32)
        params["lstm"].append({
            "wih_t": w_ih.T,          # (in_f, 4H)
            "whh_t": w_hh.T,          # (H, 4H)
            "bias": b_ih + b_hh,      # (4H,)
        })
    key, kf1, kf2 = jax.random.split(key, 3)
    stdv_fc = 1.0 / math.sqrt(hidden_size)
    fc_w = jax.random.uniform(kf1, (input_size, hidden_size),
                              minval=-stdv_fc, maxval=stdv_fc, dtype=jnp.float32)
    fc_b = jax.random.uniform(kf2, (input_size,),
                              minval=-stdv_fc, maxval=stdv_fc, dtype=jnp.float32)
    params["fc_w_t"] = fc_w.T         # (H, input_size)
    params["fc_b"] = fc_b
    return params


# ----------------------------------------------------------------------------
# Pure-JAX reference (for correctness check).  matmul_dtype lets us build both
# an exact-f32 reference (PyTorch semantics) and a bf16-operand-matched
# reference (same matmul precision as the kernel).
# ----------------------------------------------------------------------------
def reference_forward(x, params, matmul_dtype=jnp.float32):
    B, T = x.shape[0], x.shape[1]
    x = x.reshape(B, T, -1).astype(jnp.float32)
    seq = x
    for layer in params["lstm"]:
        H = layer["whh_t"].shape[0]
        wih = layer["wih_t"].astype(matmul_dtype)
        whh = layer["whh_t"].astype(matmul_dtype)
        h = jnp.zeros((B, H), jnp.float32)
        c = jnp.zeros((B, H), jnp.float32)
        outs = []
        for t in range(T):
            gates = (
                jnp.dot(seq[:, t, :].astype(matmul_dtype), wih,
                        preferred_element_type=jnp.float32)
                + jnp.dot(h.astype(matmul_dtype), whh,
                          preferred_element_type=jnp.float32)
                + layer["bias"]
            )
            i_g = jax.nn.sigmoid(gates[:, 0 * H:1 * H])
            f_g = jax.nn.sigmoid(gates[:, 1 * H:2 * H])
            g_g = jnp.tanh(gates[:, 2 * H:3 * H])
            o_g = jax.nn.sigmoid(gates[:, 3 * H:4 * H])
            c = f_g * c + i_g * g_g
            h = o_g * jnp.tanh(c)
            outs.append(h)
        seq = jnp.stack(outs, axis=1)
    return (jnp.dot(seq[:, -1, :].astype(matmul_dtype),
                    params["fc_w_t"].astype(matmul_dtype),
                    preferred_element_type=jnp.float32)
            + params["fc_b"])


# ----------------------------------------------------------------------------
if __name__ == "__main__":
    # Small shapes: batch=2, seq=8, per-step spatial features 4x4 -> input=16.
    B, T, S = 2, 8, 4
    lstm_layers = 2
    hidden_size = 32
    input_size = S * S

    key = jax.random.PRNGKey(0)
    key, kx = jax.random.split(key)
    x = jax.random.normal(kx, (B, T, S, S), dtype=jnp.float32)

    params = init_params(key, lstm_layers, hidden_size, input_size)

    out = lstm_temperature_forward(x, params)
    out = jax.block_until_ready(out)
    assert out.shape == (B, input_size), out.shape

    # Tight check: reference with the same bf16 matmul-operand precision
    # (validates gate order, bias handling, recurrence wiring, fused FC).
    ref_bf16 = reference_forward(x, params, jnp.bfloat16)
    err_bf16 = float(jnp.max(jnp.abs(out - ref_bf16)))
    assert jnp.allclose(out, ref_bf16, atol=5e-3, rtol=5e-3), (
        f"mismatch vs bf16-matched reference: max abs err {err_bf16}")

    # Loose check: exact f32 reference (bounds the bf16 drift through the
    # T-step recurrence).
    ref_f32 = reference_forward(x, params, jnp.float32)
    err_f32 = float(jnp.max(jnp.abs(out - ref_f32)))
    assert jnp.allclose(out, ref_f32, atol=5e-2, rtol=5e-2), (
        f"mismatch vs f32 reference: max abs err {err_f32}")

    print("KERNEL_OK")
</pallas_src>

<mosaic_0001>
module attributes {stable_mosaic.version = 11 : i64} {
  func.func @kernel(%arg0: memref<64x16xbf16, #tpu.memory_space<vmem>>, %arg1: memref<16x128xbf16, #tpu.memory_space<vmem>>, %arg2: memref<32x128xbf16, #tpu.memory_space<vmem>>, %arg3: memref<1x128xf32, #tpu.memory_space<vmem>>, %arg4: memref<32x128xbf16, #tpu.memory_space<vmem>>, %arg5: memref<32x128xbf16, #tpu.memory_space<vmem>>, %arg6: memref<1x128xf32, #tpu.memory_space<vmem>>, %arg7: memref<32x16xbf16, #tpu.memory_space<vmem>>, %arg8: memref<1x16xf32, #tpu.memory_space<vmem>>, %arg9: memref<8x16xf32, #tpu.memory_space<vmem>>) attributes {dimension_semantics = [], scalar_prefetch = 0 : i64, scratch_operands = 0 : i64, tpu.core_type = #tpu.core_type<tc>} {
    %c0 = arith.constant 0 : index
    %c0_0 = arith.constant 0 : index
    %0 = vector.load %arg0[%c0, %c0_0] : memref<64x16xbf16, #tpu.memory_space<vmem>>, vector<64x16xbf16>
    %c0_1 = arith.constant 0 : index
    %c0_2 = arith.constant 0 : index
    %1 = vector.load %arg1[%c0_1, %c0_2] : memref<16x128xbf16, #tpu.memory_space<vmem>>, vector<16x128xbf16>
    %c0_3 = arith.constant 0 : index
    %c0_4 = arith.constant 0 : index
    %2 = vector.load %arg2[%c0_3, %c0_4] : memref<32x128xbf16, #tpu.memory_space<vmem>>, vector<32x128xbf16>
    %c0_5 = arith.constant 0 : index
    %c0_6 = arith.constant 0 : index
    %3 = vector.load %arg3[%c0_5, %c0_6] : memref<1x128xf32, #tpu.memory_space<vmem>>, vector<1x128xf32>
    %cst = arith.constant dense<0.000000e+00> : vector<64x128xf32>
    %4 = tpu.matmul %0, %1, %cst {dimension_numbers = #tpu.dot_dimension_numbers<[1], [0], [0], [1], [0, 0, 1, 1], [], []>} : vector<64x16xbf16>, vector<16x128xbf16>, vector<64x128xf32> -> vector<64x128xf32>
    %5 = vector.broadcast %3 : vector<1x128xf32> to vector<64x128xf32>
    %6 = arith.addf %4, %5 : vector<64x128xf32>
    %cst_7 = arith.constant 0.000000e+00 : f32
    %7 = vector.broadcast %cst_7 : f32 to vector<8x32xf32>
    %cst_8 = arith.constant 0.000000e+00 : f32
    %8 = vector.broadcast %cst_8 : f32 to vector<8x32xf32>
    %9 = vector.extract_strided_slice %6 {offsets = [0, 0], sizes = [8, 128], strides = [1, 1]} : vector<64x128xf32> to vector<8x128xf32>
    %10 = arith.truncf %7 : vector<8x32xf32> to vector<8x32xbf16>
    %cst_9 = arith.constant dense<0.000000e+00> : vector<8x128xf32>
    %11 = tpu.matmul %10, %2, %cst_9 {dimension_numbers = #tpu.dot_dimension_numbers<[1], [0], [0], [1], [0, 0, 1, 1], [], []>} : vector<8x32xbf16>, vector<32x128xbf16>, vector<8x128xf32> -> vector<8x128xf32>
    %12 = arith.addf %9, %11 : vector<8x128xf32>
    %13 = math.tanh %12 : vector<8x128xf32>
    %cst_10 = arith.constant 5.000000e-01 : f32
    %14 = vector.broadcast %cst_10 : f32 to vector<8x128xf32>
    %15 = arith.mulf %14, %13 : vector<8x128xf32>
    %cst_11 = arith.constant 5.000000e-01 : f32
    %16 = vector.broadcast %cst_11 : f32 to vector<8x128xf32>
    %17 = arith.addf %15, %16 : vector<8x128xf32>
    %18 = vector.extract_strided_slice %17 {offsets = [0, 0], sizes = [8, 32], strides = [1, 1]} : vector<8x128xf32> to vector<8x32xf32>
    %19 = vector.extract_strided_slice %17 {offsets = [0, 32], sizes = [8, 32], strides = [1, 1]} : vector<8x128xf32> to vector<8x32xf32>
    %20 = vector.extract_strided_slice %13 {offsets = [0, 64], sizes = [8, 32], strides = [1, 1]} : vector<8x128xf32> to vector<8x32xf32>
    %21 = vector.extract_strided_slice %17 {offsets = [0, 96], sizes = [8, 32], strides = [1, 1]} : vector<8x128xf32> to vector<8x32xf32>
    %22 = arith.mulf %19, %8 : vector<8x32xf32>
    %23 = arith.mulf %18, %20 : vector<8x32xf32>
    %24 = arith.addf %22, %23 : vector<8x32xf32>
    %25 = math.tanh %24 : vector<8x32xf32>
    %26 = arith.mulf %21, %25 : vector<8x32xf32>
    %27 = vector.extract_strided_slice %6 {offsets = [8, 0], sizes = [8, 128], strides = [1, 1]} : vector<64x128xf32> to vector<8x128xf32>
    %28 = arith.truncf %26 : vector<8x32xf32> to vector<8x32xbf16>
    %cst_12 = arith.constant dense<0.000000e+00> : vector<8x128xf32>
    %29 = tpu.matmul %28, %2, %cst_12 {dimension_numbers = #tpu.dot_dimension_numbers<[1], [0], [0], [1], [0, 0, 1, 1], [], []>} : vector<8x32xbf16>, vector<32x128xbf16>, vector<8x128xf32> -> vector<8x128xf32>
    %30 = arith.addf %27, %29 : vector<8x128xf32>
    %31 = math.tanh %30 : vector<8x128xf32>
    %cst_13 = arith.constant 5.000000e-01 : f32
    %32 = vector.broadcast %cst_13 : f32 to vector<8x128xf32>
    %33 = arith.mulf %32, %31 : vector<8x128xf32>
    %cst_14 = arith.constant 5.000000e-01 : f32
    %34 = vector.broadcast %cst_14 : f32 to vector<8x128xf32>
    %35 = arith.addf %33, %34 : vector<8x128xf32>
    %36 = vector.extract_strided_slice %35 {offsets = [0, 0], sizes = [8, 32], strides = [1, 1]} : vector<8x128xf32> to vector<8x32xf32>
    %37 = vector.extract_strided_slice %35 {offsets = [0, 32], sizes = [8, 32], strides = [1, 1]} : vector<8x128xf32> to vector<8x32xf32>
    %38 = vector.extract_strided_slice %31 {offsets = [0, 64], sizes = [8, 32], strides = [1, 1]} : vector<8x128xf32> to vector<8x32xf32>
    %39 = vector.extract_strided_slice %35 {offsets = [0, 96], sizes = [8, 32], strides = [1, 1]} : vector<8x128xf32> to vector<8x32xf32>
    %40 = arith.mulf %37, %24 : vector<8x32xf32>
    %41 = arith.mulf %36, %38 : vector<8x32xf32>
    %42 = arith.addf %40, %41 : vector<8x32xf32>
    %43 = math.tanh %42 : vector<8x32xf32>
    %44 = arith.mulf %39, %43 : vector<8x32xf32>
    %45 = vector.extract_strided_slice %6 {offsets = [16, 0], sizes = [8, 128], strides = [1, 1]} : vector<64x128xf32> to vector<8x128xf32>
    %46 = arith.truncf %44 : vector<8x32xf32> to vector<8x32xbf16>
    %cst_15 = arith.constant dense<0.000000e+00> : vector<8x128xf32>
    %47 = tpu.matmul %46, %2, %cst_15 {dimension_numbers = #tpu.dot_dimension_numbers<[1], [0], [0], [1], [0, 0, 1, 1], [], []>} : vector<8x32xbf16>, vector<32x128xbf16>, vector<8x128xf32> -> vector<8x128xf32>
    %48 = arith.addf %45, %47 : vector<8x128xf32>
    %49 = math.tanh %48 : vector<8x128xf32>
    %cst_16 = arith.constant 5.000000e-01 : f32
    %50 = vector.broadcast %cst_16 : f32 to vector<8x128xf32>
    %51 = arith.mulf %50, %49 : vector<8x128xf32>
    %cst_17 = arith.constant 5.000000e-01 : f32
    %52 = vector.broadcast %cst_17 : f32 to vector<8x128xf32>
    %53 = arith.addf %51, %52 : vector<8x128xf32>
    %54 = vector.extract_strided_slice %53 {offsets = [0, 0], sizes = [8, 32], strides = [1, 1]} : vector<8x128xf32> to vector<8x32xf32>
    %55 = vector.extract_strided_slice %53 {offsets = [0, 32], sizes = [8, 32], strides = [1, 1]} : vector<8x128xf32> to vector<8x32xf32>
    %56 = vector.extract_strided_slice %49 {offsets = [0, 64], sizes = [8, 32], strides = [1, 1]} : vector<8x128xf32> to vector<8x32xf32>
    %57 = vector.extract_strided_slice %53 {offsets = [0, 96], sizes = [8, 32], strides = [1, 1]} : vector<8x128xf32> to vector<8x32xf32>
    %58 = arith.mulf %55, %42 : vector<8x32xf32>
    %59 = arith.mulf %54, %56 : vector<8x32xf32>
    %60 = arith.addf %58, %59 : vector<8x32xf32>
    %61 = math.tanh %60 : vector<8x32xf32>
    %62 = arith.mulf %57, %61 : vector<8x32xf32>
    %63 = vector.extract_strided_slice %6 {offsets = [24, 0], sizes = [8, 128], strides = [1, 1]} : vector<64x128xf32> to vector<8x128xf32>
    %64 = arith.truncf %62 : vector<8x32xf32> to vector<8x32xbf16>
    %cst_18 = arith.constant dense<0.000000e+00> : vector<8x128xf32>
    %65 = tpu.matmul %64, %2, %cst_18 {dimension_numbers = #tpu.dot_dimension_numbers<[1], [0], [0], [1], [0, 0, 1, 1], [], []>} : vector<8x32xbf16>, vector<32x128xbf16>, vector<8x128xf32> -> vector<8x128xf32>
    %66 = arith.addf %63, %65 : vector<8x128xf32>
    %67 = math.tanh %66 : vector<8x128xf32>
    %cst_19 = arith.constant 5.000000e-01 : f32
    %68 = vector.broadcast %cst_19 : f32 to vector<8x128xf32>
    %69 = arith.mulf %68, %67 : vector<8x128xf32>
    %cst_20 = arith.constant 5.000000e-01 : f32
    %70 = vector.broadcast %cst_20 : f32 to vector<8x128xf32>
    %71 = arith.addf %69, %70 : vector<8x128xf32>
    %72 = vector.extract_strided_slice %71 {offsets = [0, 0], sizes = [8, 32], strides = [1, 1]} : vector<8x128xf32> to vector<8x32xf32>
    %73 = vector.extract_strided_slice %71 {offsets = [0, 32], sizes = [8, 32], strides = [1, 1]} : vector<8x128xf32> to vector<8x32xf32>
    %74 = vector.extract_strided_slice %67 {offsets = [0, 64], sizes = [8, 32], strides = [1, 1]} : vector<8x128xf32> to vector<8x32xf32>
    %75 = vector.extract_strided_slice %71 {offsets = [0, 96], sizes = [8, 32], strides = [1, 1]} : vector<8x128xf32> to vector<8x32xf32>
    %76 = arith.mulf %73, %60 : vector<8x32xf32>
    %77 = arith.mulf %72, %74 : vector<8x32xf32>
    %78 = arith.addf %76, %77 : vector<8x32xf32>
    %79 = math.tanh %78 : vector<8x32xf32>
    %80 = arith.mulf %75, %79 : vector<8x32xf32>
    %81 = vector.extract_strided_slice %6 {offsets = [32, 0], sizes = [8, 128], strides = [1, 1]} : vector<64x128xf32> to vector<8x128xf32>
    %82 = arith.truncf %80 : vector<8x32xf32> to vector<8x32xbf16>
    %cst_21 = arith.constant dense<0.000000e+00> : vector<8x128xf32>
    %83 = tpu.matmul %82, %2, %cst_21 {dimension_numbers = #tpu.dot_dimension_numbers<[1], [0], [0], [1], [0, 0, 1, 1], [], []>} : vector<8x32xbf16>, vector<32x128xbf16>, vector<8x128xf32> -> vector<8x128xf32>
    %84 = arith.addf %81, %83 : vector<8x128xf32>
    %85 = math.tanh %84 : vector<8x128xf32>
    %cst_22 = arith.constant 5.000000e-01 : f32
    %86 = vector.broadcast %cst_22 : f32 to vector<8x128xf32>
    %87 = arith.mulf %86, %85 : vector<8x128xf32>
    %cst_23 = arith.constant 5.000000e-01 : f32
    %88 = vector.broadcast %cst_23 : f32 to vector<8x128xf32>
    %89 = arith.addf %87, %88 : vector<8x128xf32>
    %90 = vector.extract_strided_slice %89 {offsets = [0, 0], sizes = [8, 32], strides = [1, 1]} : vector<8x128xf32> to vector<8x32xf32>
    %91 = vector.extract_strided_slice %89 {offsets = [0, 32], sizes = [8, 32], strides = [1, 1]} : vector<8x128xf32> to vector<8x32xf32>
    %92 = vector.extract_strided_slice %85 {offsets = [0, 64], sizes = [8, 32], strides = [1, 1]} : vector<8x128xf32> to vector<8x32xf32>
    %93 = vector.extract_strided_slice %89 {offsets = [0, 96], sizes = [8, 32], strides = [1, 1]} : vector<8x128xf32> to vector<8x32xf32>
    %94 = arith.mulf %91, %78 : vector<8x32xf32>
    %95 = arith.mulf %90, %92 : vector<8x32xf32>
    %96 = arith.addf %94, %95 : vector<8x32xf32>
    %97 = math.tanh %96 : vector<8x32xf32>
    %98 = arith.mulf %93, %97 : vector<8x32xf32>
    %99 = vector.extract_strided_slice %6 {offsets = [40, 0], sizes = [8, 128], strides = [1, 1]} : vector<64x128xf32> to vector<8x128xf32>
    %100 = arith.truncf %98 : vector<8x32xf32> to vector<8x32xbf16>
    %cst_24 = arith.constant dense<0.000000e+00> : vector<8x128xf32>
    %101 = tpu.matmul %100, %2, %cst_24 {dimension_numbers = #tpu.dot_dimension_numbers<[1], [0], [0], [1], [0, 0, 1, 1], [], []>} : vector<8x32xbf16>, vector<32x128xbf16>, vector<8x128xf32> -> vector<8x128xf32>
    %102 = arith.addf %99, %101 : vector<8x128xf32>
    %103 = math.tanh %102 : vector<8x128xf32>
    %cst_25 = arith.constant 5.000000e-01 : f32
    %104 = vector.broadcast %cst_25 : f32 to vector<8x128xf32>
    %105 = arith.mulf %104, %103 : vector<8x128xf32>
    %cst_26 = arith.constant 5.000000e-01 : f32
    %106 = vector.broadcast %cst_26 : f32 to vector<8x128xf32>
    %107 = arith.addf %105, %106 : vector<8x128xf32>
    %108 = vector.extract_strided_slice %107 {offsets = [0, 0], sizes = [8, 32], strides = [1, 1]} : vector<8x128xf32> to vector<8x32xf32>
    %109 = vector.extract_strided_slice %107 {offsets = [0, 32], sizes = [8, 32], strides = [1, 1]} : vector<8x128xf32> to vector<8x32xf32>
    %110 = vector.extract_strided_slice %103 {offsets = [0, 64], sizes = [8, 32], strides = [1, 1]} : vector<8x128xf32> to vector<8x32xf32>
    %111 = vector.extract_strided_slice %107 {offsets = [0, 96], sizes = [8, 32], strides = [1, 1]} : vector<8x128xf32> to vector<8x32xf32>
    %112 = arith.mulf %109, %96 : vector<8x32xf32>
    %113 = arith.mulf %108, %110 : vector<8x32xf32>
    %114 = arith.addf %112, %113 : vector<8x32xf32>
    %115 = math.tanh %114 : vector<8x32xf32>
    %116 = arith.mulf %111, %115 : vector<8x32xf32>
    %117 = vector.extract_strided_slice %6 {offsets = [48, 0], sizes = [8, 128], strides = [1, 1]} : vector<64x128xf32> to vector<8x128xf32>
    %118 = arith.truncf %116 : vector<8x32xf32> to vector<8x32xbf16>
    %cst_27 = arith.constant dense<0.000000e+00> : vector<8x128xf32>
    %119 = tpu.matmul %118, %2, %cst_27 {dimension_numbers = #tpu.dot_dimension_numbers<[1], [0], [0], [1], [0, 0, 1, 1], [], []>} : vector<8x32xbf16>, vector<32x128xbf16>, vector<8x128xf32> -> vector<8x128xf32>
    %120 = arith.addf %117, %119 : vector<8x128xf32>
    %121 = math.tanh %120 : vector<8x128xf32>
    %cst_28 = arith.constant 5.000000e-01 : f32
    %122 = vector.broadcast %cst_28 : f32 to vector<8x128xf32>
    %123 = arith.mulf %122, %121 : vector<8x128xf32>
    %cst_29 = arith.constant 5.000000e-01 : f32
    %124 = vector.broadcast %cst_29 : f32 to vector<8x128xf32>
    %125 = arith.addf %123, %124 : vector<8x128xf32>
    %126 = vector.extract_strided_slice %125 {offsets = [0, 0], sizes = [8, 32], strides = [1, 1]} : vector<8x128xf32> to vector<8x32xf32>
    %127 = vector.extract_strided_slice %125 {offsets = [0, 32], sizes = [8, 32], strides = [1, 1]} : vector<8x128xf32> to vector<8x32xf32>
    %128 = vector.extract_strided_slice %121 {offsets = [0, 64], sizes = [8, 32], strides = [1, 1]} : vector<8x128xf32> to vector<8x32xf32>
    %129 = vector.extract_strided_slice %125 {offsets = [0, 96], sizes = [8, 32], strides = [1, 1]} : vector<8x128xf32> to vector<8x32xf32>
    %130 = arith.mulf %127, %114 : vector<8x32xf32>
    %131 = arith.mulf %126, %128 : vector<8x32xf32>
    %132 = arith.addf %130, %131 : vector<8x32xf32>
    %133 = math.tanh %132 : vector<8x32xf32>
    %134 = arith.mulf %129, %133 : vector<8x32xf32>
    %135 = vector.extract_strided_slice %6 {offsets = [56, 0], sizes = [8, 128], strides = [1, 1]} : vector<64x128xf32> to vector<8x128xf32>
    %136 = arith.truncf %134 : vector<8x32xf32> to vector<8x32xbf16>
    %cst_30 = arith.constant dense<0.000000e+00> : vector<8x128xf32>
    %137 = tpu.matmul %136, %2, %cst_30 {dimension_numbers = #tpu.dot_dimension_numbers<[1], [0], [0], [1], [0, 0, 1, 1], [], []>} : vector<8x32xbf16>, vector<32x128xbf16>, vector<8x128xf32> -> vector<8x128xf32>
    %138 = arith.addf %135, %137 : vector<8x128xf32>
    %139 = math.tanh %138 : vector<8x128xf32>
    %cst_31 = arith.constant 5.000000e-01 : f32
    %140 = vector.broadcast %cst_31 : f32 to vector<8x128xf32>
    %141 = arith.mulf %140, %139 : vector<8x128xf32>
    %cst_32 = arith.constant 5.000000e-01 : f32
    %142 = vector.broadcast %cst_32 : f32 to vector<8x128xf32>
    %143 = arith.addf %141, %142 : vector<8x128xf32>
    %144 = vector.extract_strided_slice %143 {offsets = [0, 0], sizes = [8, 32], strides = [1, 1]} : vector<8x128xf32> to vector<8x32xf32>
    %145 = vector.extract_strided_slice %143 {offsets = [0, 32], sizes = [8, 32], strides = [1, 1]} : vector<8x128xf32> to vector<8x32xf32>
    %146 = vector.extract_strided_slice %139 {offsets = [0, 64], sizes = [8, 32], strides = [1, 1]} : vector<8x128xf32> to vector<8x32xf32>
    %147 = vector.extract_strided_slice %143 {offsets = [0, 96], sizes = [8, 32], strides = [1, 1]} : vector<8x128xf32> to vector<8x32xf32>
    %148 = arith.mulf %145, %132 : vector<8x32xf32>
    %149 = arith.mulf %144, %146 : vector<8x32xf32>
    %150 = arith.addf %148, %149 : vector<8x32xf32>
    %151 = math.tanh %150 : vector<8x32xf32>
    %152 = arith.mulf %147, %151 : vector<8x32xf32>
    %153 = tpu.concatenate %26, %44, %62, %80, %98, %116, %134, %152 in 0 : vector<8x32xf32>, vector<8x32xf32>, vector<8x32xf32>, vector<8x32xf32>, vector<8x32xf32>, vector<8x32xf32>, vector<8x32xf32>, vector<8x32xf32> -> vector<64x32xf32>
    %154 = arith.truncf %153 : vector<64x32xf32> to vector<64x32xbf16>
    %c0_33 = arith.constant 0 : index
    %c0_34 = arith.constant 0 : index
    %155 = vector.load %arg4[%c0_33, %c0_34] : memref<32x128xbf16, #tpu.memory_space<vmem>>, vector<32x128xbf16>
    %c0_35 = arith.constant 0 : index
    %c0_36 = arith.constant 0 : index
    %156 = vector.load %arg5[%c0_35, %c0_36] : memref<32x128xbf16, #tpu.memory_space<vmem>>, vector<32x128xbf16>
    %c0_37 = arith.constant 0 : index
    %c0_38 = arith.constant 0 : index
    %157 = vector.load %arg6[%c0_37, %c0_38] : memref<1x128xf32, #tpu.memory_space<vmem>>, vector<1x128xf32>
    %cst_39 = arith.constant dense<0.000000e+00> : vector<64x128xf32>
    %158 = tpu.matmul %154, %155, %cst_39 {dimension_numbers = #tpu.dot_dimension_numbers<[1], [0], [0], [1], [0, 0, 1, 1], [], []>} : vector<64x32xbf16>, vector<32x128xbf16>, vector<64x128xf32> -> vector<64x128xf32>
    %159 = vector.broadcast %157 : vector<1x128xf32> to vector<64x128xf32>
    %160 = arith.addf %158, %159 : vector<64x128xf32>
    %cst_40 = arith.constant 0.000000e+00 : f32
    %161 = vector.broadcast %cst_40 : f32 to vector<8x32xf32>
    %cst_41 = arith.constant 0.000000e+00 : f32
    %162 = vector.broadcast %cst_41 : f32 to vector<8x32xf32>
    %163 = vector.extract_strided_slice %160 {offsets = [0, 0], sizes = [8, 128], strides = [1, 1]} : vector<64x128xf32> to vector<8x128xf32>
    %164 = arith.truncf %161 : vector<8x32xf32> to vector<8x32xbf16>
    %cst_42 = arith.constant dense<0.000000e+00> : vector<8x128xf32>
    %165 = tpu.matmul %164, %156, %cst_42 {dimension_numbers = #tpu.dot_dimension_numbers<[1], [0], [0], [1], [0, 0, 1, 1], [], []>} : vector<8x32xbf16>, vector<32x128xbf16>, vector<8x128xf32> -> vector<8x128xf32>
    %166 = arith.addf %163, %165 : vector<8x128xf32>
    %167 = math.tanh %166 : vector<8x128xf32>
    %cst_43 = arith.constant 5.000000e-01 : f32
    %168 = vector.broadcast %cst_43 : f32 to vector<8x128xf32>
    %169 = arith.mulf %168, %167 : vector<8x128xf32>
    %cst_44 = arith.constant 5.000000e-01 : f32
    %170 = vector.broadcast %cst_44 : f32 to vector<8x128xf32>
    %171 = arith.addf %169, %170 : vector<8x128xf32>
    %172 = vector.extract_strided_slice %171 {offsets = [0, 0], sizes = [8, 32], strides = [1, 1]} : vector<8x128xf32> to vector<8x32xf32>
    %173 = vector.extract_strided_slice %171 {offsets = [0, 32], sizes = [8, 32], strides = [1, 1]} : vector<8x128xf32> to vector<8x32xf32>
    %174 = vector.extract_strided_slice %167 {offsets = [0, 64], sizes = [8, 32], strides = [1, 1]} : vector<8x128xf32> to vector<8x32xf32>
    %175 = vector.extract_strided_slice %171 {offsets = [0, 96], sizes = [8, 32], strides = [1, 1]} : vector<8x128xf32> to vector<8x32xf32>
    %176 = arith.mulf %173, %162 : vector<8x32xf32>
    %177 = arith.mulf %172, %174 : vector<8x32xf32>
    %178 = arith.addf %176, %177 : vector<8x32xf32>
    %179 = math.tanh %178 : vector<8x32xf32>
    %180 = arith.mulf %175, %179 : vector<8x32xf32>
    %181 = vector.extract_strided_slice %160 {offsets = [8, 0], sizes = [8, 128], strides = [1, 1]} : vector<64x128xf32> to vector<8x128xf32>
    %182 = arith.truncf %180 : vector<8x32xf32> to vector<8x32xbf16>
    %cst_45 = arith.constant dense<0.000000e+00> : vector<8x128xf32>
    %183 = tpu.matmul %182, %156, %cst_45 {dimension_numbers = #tpu.dot_dimension_numbers<[1], [0], [0], [1], [0, 0, 1, 1], [], []>} : vector<8x32xbf16>, vector<32x128xbf16>, vector<8x128xf32> -> vector<8x128xf32>
    %184 = arith.addf %181, %183 : vector<8x128xf32>
    %185 = math.tanh %184 : vector<8x128xf32>
    %cst_46 = arith.constant 5.000000e-01 : f32
    %186 = vector.broadcast %cst_46 : f32 to vector<8x128xf32>
    %187 = arith.mulf %186, %185 : vector<8x128xf32>
    %cst_47 = arith.constant 5.000000e-01 : f32
    %188 = vector.broadcast %cst_47 : f32 to vector<8x128xf32>
    %189 = arith.addf %187, %188 : vector<8x128xf32>
    %190 = vector.extract_strided_slice %189 {offsets = [0, 0], sizes = [8, 32], strides = [1, 1]} : vector<8x128xf32> to vector<8x32xf32>
    %191 = vector.extract_strided_slice %189 {offsets = [0, 32], sizes = [8, 32], strides = [1, 1]} : vector<8x128xf32> to vector<8x32xf32>
    %192 = vector.extract_strided_slice %185 {offsets = [0, 64], sizes = [8, 32], strides = [1, 1]} : vector<8x128xf32> to vector<8x32xf32>
    %193 = vector.extract_strided_slice %189 {offsets = [0, 96], sizes = [8, 32], strides = [1, 1]} : vector<8x128xf32> to vector<8x32xf32>
    %194 = arith.mulf %191, %178 : vector<8x32xf32>
    %195 = arith.mulf %190, %192 : vector<8x32xf32>
    %196 = arith.addf %194, %195 : vector<8x32xf32>
    %197 = math.tanh %196 : vector<8x32xf32>
    %198 = arith.mulf %193, %197 : vector<8x32xf32>
    %199 = vector.extract_strided_slice %160 {offsets = [16, 0], sizes = [8, 128], strides = [1, 1]} : vector<64x128xf32> to vector<8x128xf32>
    %200 = arith.truncf %198 : vector<8x32xf32> to vector<8x32xbf16>
    %cst_48 = arith.constant dense<0.000000e+00> : vector<8x128xf32>
    %201 = tpu.matmul %200, %156, %cst_48 {dimension_numbers = #tpu.dot_dimension_numbers<[1], [0], [0], [1], [0, 0, 1, 1], [], []>} : vector<8x32xbf16>, vector<32x128xbf16>, vector<8x128xf32> -> vector<8x128xf32>
    %202 = arith.addf %199, %201 : vector<8x128xf32>
    %203 = math.tanh %202 : vector<8x128xf32>
    %cst_49 = arith.constant 5.000000e-01 : f32
    %204 = vector.broadcast %cst_49 : f32 to vector<8x128xf32>
    %205 = arith.mulf %204, %203 : vector<8x128xf32>
    %cst_50 = arith.constant 5.000000e-01 : f32
    %206 = vector.broadcast %cst_50 : f32 to vector<8x128xf32>
    %207 = arith.addf %205, %206 : vector<8x128xf32>
    %208 = vector.extract_strided_slice %207 {offsets = [0, 0], sizes = [8, 32], strides = [1, 1]} : vector<8x128xf32> to vector<8x32xf32>
    %209 = vector.extract_strided_slice %207 {offsets = [0, 32], sizes = [8, 32], strides = [1, 1]} : vector<8x128xf32> to vector<8x32xf32>
    %210 = vector.extract_strided_slice %203 {offsets = [0, 64], sizes = [8, 32], strides = [1, 1]} : vector<8x128xf32> to vector<8x32xf32>
    %211 = vector.extract_strided_slice %207 {offsets = [0, 96], sizes = [8, 32], strides = [1, 1]} : vector<8x128xf32> to vector<8x32xf32>
    %212 = arith.mulf %209, %196 : vector<8x32xf32>
    %213 = arith.mulf %208, %210 : vector<8x32xf32>
    %214 = arith.addf %212, %213 : vector<8x32xf32>
    %215 = math.tanh %214 : vector<8x32xf32>
    %216 = arith.mulf %211, %215 : vector<8x32xf32>
    %217 = vector.extract_strided_slice %160 {offsets = [24, 0], sizes = [8, 128], strides = [1, 1]} : vector<64x128xf32> to vector<8x128xf32>
    %218 = arith.truncf %216 : vector<8x32xf32> to vector<8x32xbf16>
    %cst_51 = arith.constant dense<0.000000e+00> : vector<8x128xf32>
    %219 = tpu.matmul %218, %156, %cst_51 {dimension_numbers = #tpu.dot_dimension_numbers<[1], [0], [0], [1], [0, 0, 1, 1], [], []>} : vector<8x32xbf16>, vector<32x128xbf16>, vector<8x128xf32> -> vector<8x128xf32>
    %220 = arith.addf %217, %219 : vector<8x128xf32>
    %221 = math.tanh %220 : vector<8x128xf32>
    %cst_52 = arith.constant 5.000000e-01 : f32
    %222 = vector.broadcast %cst_52 : f32 to vector<8x128xf32>
    %223 = arith.mulf %222, %221 : vector<8x128xf32>
    %cst_53 = arith.constant 5.000000e-01 : f32
    %224 = vector.broadcast %cst_53 : f32 to vector<8x128xf32>
    %225 = arith.addf %223, %224 : vector<8x128xf32>
    %226 = vector.extract_strided_slice %225 {offsets = [0, 0], sizes = [8, 32], strides = [1, 1]} : vector<8x128xf32> to vector<8x32xf32>
    %227 = vector.extract_strided_slice %225 {offsets = [0, 32], sizes = [8, 32], strides = [1, 1]} : vector<8x128xf32> to vector<8x32xf32>
    %228 = vector.extract_strided_slice %221 {offsets = [0, 64], sizes = [8, 32], strides = [1, 1]} : vector<8x128xf32> to vector<8x32xf32>
    %229 = vector.extract_strided_slice %225 {offsets = [0, 96], sizes = [8, 32], strides = [1, 1]} : vector<8x128xf32> to vector<8x32xf32>
    %230 = arith.mulf %227, %214 : vector<8x32xf32>
    %231 = arith.mulf %226, %228 : vector<8x32xf32>
    %232 = arith.addf %230, %231 : vector<8x32xf32>
    %233 = math.tanh %232 : vector<8x32xf32>
    %234 = arith.mulf %229, %233 : vector<8x32xf32>
    %235 = vector.extract_strided_slice %160 {offsets = [32, 0], sizes = [8, 128], strides = [1, 1]} : vector<64x128xf32> to vector<8x128xf32>
    %236 = arith.truncf %234 : vector<8x32xf32> to vector<8x32xbf16>
    %cst_54 = arith.constant dense<0.000000e+00> : vector<8x128xf32>
    %237 = tpu.matmul %236, %156, %cst_54 {dimension_numbers = #tpu.dot_dimension_numbers<[1], [0], [0], [1], [0, 0, 1, 1], [], []>} : vector<8x32xbf16>, vector<32x128xbf16>, vector<8x128xf32> -> vector<8x128xf32>
    %238 = arith.addf %235, %237 : vector<8x128xf32>
    %239 = math.tanh %238 : vector<8x128xf32>
    %cst_55 = arith.constant 5.000000e-01 : f32
    %240 = vector.broadcast %cst_55 : f32 to vector<8x128xf32>
    %241 = arith.mulf %240, %239 : vector<8x128xf32>
    %cst_56 = arith.constant 5.000000e-01 : f32
    %242 = vector.broadcast %cst_56 : f32 to vector<8x128xf32>
    %243 = arith.addf %241, %242 : vector<8x128xf32>
    %244 = vector.extract_strided_slice %243 {offsets = [0, 0], sizes = [8, 32], strides = [1, 1]} : vector<8x128xf32> to vector<8x32xf32>
    %245 = vector.extract_strided_slice %243 {offsets = [0, 32], sizes = [8, 32], strides = [1, 1]} : vector<8x128xf32> to vector<8x32xf32>
    %246 = vector.extract_strided_slice %239 {offsets = [0, 64], sizes = [8, 32], strides = [1, 1]} : vector<8x128xf32> to vector<8x32xf32>
    %247 = vector.extract_strided_slice %243 {offsets = [0, 96], sizes = [8, 32], strides = [1, 1]} : vector<8x128xf32> to vector<8x32xf32>
    %248 = arith.mulf %245, %232 : vector<8x32xf32>
    %249 = arith.mulf %244, %246 : vector<8x32xf32>
    %250 = arith.addf %248, %249 : vector<8x32xf32>
    %251 = math.tanh %250 : vector<8x32xf32>
    %252 = arith.mulf %247, %251 : vector<8x32xf32>
    %253 = vector.extract_strided_slice %160 {offsets = [40, 0], sizes = [8, 128], strides = [1, 1]} : vector<64x128xf32> to vector<8x128xf32>
    %254 = arith.truncf %252 : vector<8x32xf32> to vector<8x32xbf16>
    %cst_57 = arith.constant dense<0.000000e+00> : vector<8x128xf32>
    %255 = tpu.matmul %254, %156, %cst_57 {dimension_numbers = #tpu.dot_dimension_numbers<[1], [0], [0], [1], [0, 0, 1, 1], [], []>} : vector<8x32xbf16>, vector<32x128xbf16>, vector<8x128xf32> -> vector<8x128xf32>
    %256 = arith.addf %253, %255 : vector<8x128xf32>
    %257 = math.tanh %256 : vector<8x128xf32>
    %cst_58 = arith.constant 5.000000e-01 : f32
    %258 = vector.broadcast %cst_58 : f32 to vector<8x128xf32>
    %259 = arith.mulf %258, %257 : vector<8x128xf32>
    %cst_59 = arith.constant 5.000000e-01 : f32
    %260 = vector.broadcast %cst_59 : f32 to vector<8x128xf32>
    %261 = arith.addf %259, %260 : vector<8x128xf32>
    %262 = vector.extract_strided_slice %261 {offsets = [0, 0], sizes = [8, 32], strides = [1, 1]} : vector<8x128xf32> to vector<8x32xf32>
    %263 = vector.extract_strided_slice %261 {offsets = [0, 32], sizes = [8, 32], strides = [1, 1]} : vector<8x128xf32> to vector<8x32xf32>
    %264 = vector.extract_strided_slice %257 {offsets = [0, 64], sizes = [8, 32], strides = [1, 1]} : vector<8x128xf32> to vector<8x32xf32>
    %265 = vector.extract_strided_slice %261 {offsets = [0, 96], sizes = [8, 32], strides = [1, 1]} : vector<8x128xf32> to vector<8x32xf32>
    %266 = arith.mulf %263, %250 : vector<8x32xf32>
    %267 = arith.mulf %262, %264 : vector<8x32xf32>
    %268 = arith.addf %266, %267 : vector<8x32xf32>
    %269 = math.tanh %268 : vector<8x32xf32>
    %270 = arith.mulf %265, %269 : vector<8x32xf32>
    %271 = vector.extract_strided_slice %160 {offsets = [48, 0], sizes = [8, 128], strides = [1, 1]} : vector<64x128xf32> to vector<8x128xf32>
    %272 = arith.truncf %270 : vector<8x32xf32> to vector<8x32xbf16>
    %cst_60 = arith.constant dense<0.000000e+00> : vector<8x128xf32>
    %273 = tpu.matmul %272, %156, %cst_60 {dimension_numbers = #tpu.dot_dimension_numbers<[1], [0], [0], [1], [0, 0, 1, 1], [], []>} : vector<8x32xbf16>, vector<32x128xbf16>, vector<8x128xf32> -> vector<8x128xf32>
    %274 = arith.addf %271, %273 : vector<8x128xf32>
    %275 = math.tanh %274 : vector<8x128xf32>
    %cst_61 = arith.constant 5.000000e-01 : f32
    %276 = vector.broadcast %cst_61 : f32 to vector<8x128xf32>
    %277 = arith.mulf %276, %275 : vector<8x128xf32>
    %cst_62 = arith.constant 5.000000e-01 : f32
    %278 = vector.broadcast %cst_62 : f32 to vector<8x128xf32>
    %279 = arith.addf %277, %278 : vector<8x128xf32>
    %280 = vector.extract_strided_slice %279 {offsets = [0, 0], sizes = [8, 32], strides = [1, 1]} : vector<8x128xf32> to vector<8x32xf32>
    %281 = vector.extract_strided_slice %279 {offsets = [0, 32], sizes = [8, 32], strides = [1, 1]} : vector<8x128xf32> to vector<8x32xf32>
    %282 = vector.extract_strided_slice %275 {offsets = [0, 64], sizes = [8, 32], strides = [1, 1]} : vector<8x128xf32> to vector<8x32xf32>
    %283 = vector.extract_strided_slice %279 {offsets = [0, 96], sizes = [8, 32], strides = [1, 1]} : vector<8x128xf32> to vector<8x32xf32>
    %284 = arith.mulf %281, %268 : vector<8x32xf32>
    %285 = arith.mulf %280, %282 : vector<8x32xf32>
    %286 = arith.addf %284, %285 : vector<8x32xf32>
    %287 = math.tanh %286 : vector<8x32xf32>
    %288 = arith.mulf %283, %287 : vector<8x32xf32>
    %289 = vector.extract_strided_slice %160 {offsets = [56, 0], sizes = [8, 128], strides = [1, 1]} : vector<64x128xf32> to vector<8x128xf32>
    %290 = arith.truncf %288 : vector<8x32xf32> to vector<8x32xbf16>
    %cst_63 = arith.constant dense<0.000000e+00> : vector<8x128xf32>
    %291 = tpu.matmul %290, %156, %cst_63 {dimension_numbers = #tpu.dot_dimension_numbers<[1], [0], [0], [1], [0, 0, 1, 1], [], []>} : vector<8x32xbf16>, vector<32x128xbf16>, vector<8x128xf32> -> vector<8x128xf32>
    %292 = arith.addf %289, %291 : vector<8x128xf32>
    %293 = math.tanh %292 : vector<8x128xf32>
    %cst_64 = arith.constant 5.000000e-01 : f32
    %294 = vector.broadcast %cst_64 : f32 to vector<8x128xf32>
    %295 = arith.mulf %294, %293 : vector<8x128xf32>
    %cst_65 = arith.constant 5.000000e-01 : f32
    %296 = vector.broadcast %cst_65 : f32 to vector<8x128xf32>
    %297 = arith.addf %295, %296 : vector<8x128xf32>
    %298 = vector.extract_strided_slice %297 {offsets = [0, 0], sizes = [8, 32], strides = [1, 1]} : vector<8x128xf32> to vector<8x32xf32>
    %299 = vector.extract_strided_slice %297 {offsets = [0, 32], sizes = [8, 32], strides = [1, 1]} : vector<8x128xf32> to vector<8x32xf32>
    %300 = vector.extract_strided_slice %293 {offsets = [0, 64], sizes = [8, 32], strides = [1, 1]} : vector<8x128xf32> to vector<8x32xf32>
    %301 = vector.extract_strided_slice %297 {offsets = [0, 96], sizes = [8, 32], strides = [1, 1]} : vector<8x128xf32> to vector<8x32xf32>
    %302 = arith.mulf %299, %286 : vector<8x32xf32>
    %303 = arith.mulf %298, %300 : vector<8x32xf32>
    %304 = arith.addf %302, %303 : vector<8x32xf32>
    %305 = math.tanh %304 : vector<8x32xf32>
    %306 = arith.mulf %301, %305 : vector<8x32xf32>
    %307 = arith.truncf %306 : vector<8x32xf32> to vector<8x32xbf16>
    %c0_66 = arith.constant 0 : index
    %c0_67 = arith.constant 0 : index
    %308 = vector.load %arg7[%c0_66, %c0_67] : memref<32x16xbf16, #tpu.memory_space<vmem>>, vector<32x16xbf16>
    %cst_68 = arith.constant dense<0.000000e+00> : vector<8x16xf32>
    %309 = tpu.matmul %307, %308, %cst_68 {dimension_numbers = #tpu.dot_dimension_numbers<[1], [0], [0], [1], [0, 0, 1, 1], [], []>} : vector<8x32xbf16>, vector<32x16xbf16>, vector<8x16xf32> -> vector<8x16xf32>
    %c0_69 = arith.constant 0 : index
    %c0_70 = arith.constant 0 : index
    %310 = vector.load %arg8[%c0_69, %c0_70] : memref<1x16xf32, #tpu.memory_space<vmem>>, vector<1x16xf32>
    %311 = vector.broadcast %310 : vector<1x16xf32> to vector<8x16xf32>
    %312 = arith.addf %309, %311 : vector<8x16xf32>
    %c0_71 = arith.constant 0 : index
    %c0_72 = arith.constant 0 : index
    %313 = vector.load %arg9[%c0_71, %c0_72] : memref<8x16xf32, #tpu.memory_space<vmem>>, vector<8x16xf32>
    tpu.vector_store %arg9[%c0_71, %c0_72], %312 {strides = array<i32>} : memref<8x16xf32, #tpu.memory_space<vmem>>, vector<8x16xf32>,
    return
  }
}

</mosaic_0001>

<bundles_post_ra>
// kernel: tpu_custom_call.1
= control target key start
LH: loop header
LB: loop body
LE: loop exit
PB: predicated region body
PF: predicated region fallthrough
CT: control target
= control target key end

     0   :  { %v1832_v1 = vmov 0.0   ;;  %vm81_vm0 = vcmask 130048   ;;  %vm1833_vm1 = vmmov 0   ;;  %v1834_v6 = vmov 0   ;;  %s2244_s0 = inlined_call_operand.vmem [shape: bf16[64,16], index: 0, kind: input, shape index: {}]   ;;  %s2245_s1 = inlined_call_operand.vmem [shape: bf16[16,128], index: 1, kind: input, shape index: {}]   ;;  %s2246_s2 = inlined_call_operand.vmem [shape: bf16[32,128], index: 2, kind: input, shape index: {}]   ;;  %s2247_s3 = inlined_call_operand.vmem [shape: f32[1,128], index: 3, kind: input, shape index: {}]   ;;  %s2248_s4 = inlined_call_operand.vmem [shape: bf16[32,128], index: 4, kind: input, shape index: {}]   ;;  %s2249_s5 = inlined_call_operand.vmem [shape: bf16[32,128], index: 5, kind: input, shape index: {}]   ;;  %s2250_s6 = inlined_call_operand.vmem [shape: f32[1,128], index: 6, kind: input, shape index: {}]   ;;  %s2251_s7 = inlined_call_operand.vmem [shape: bf16[32,16], index: 7, kind: input, shape index: {}]   ;;  %s2252_s8 = inlined_call_operand.vmem [shape: f32[1,16], index: 8, kind: input, shape index: {}]   ;;  %s2253_s9 = inlined_call_operand.hbm [shape: f32[8,16], index: 9, kind: output, shape index: {}]  }
   0x1   :  { %v1731_v0 = vld [vmem:[%s2245_s1] sm:$0xff]   ;;  %1577 = vmatprep.subr.bf16.mxu1 %v1832_v1  ;;  %v1734_v4 = vld [vmem:[%s2244_s0 + $0x8] sm:$0xff]   ;;  %1581 = vmatprep.mubr.msk.bf16.mxu1 %vm1833_vm1, %v1832_v1 }
   0x2   :  { %v1895_v2 = vld [vmem:[%s2246_s2] sm:$0xff]   ;;  %1567 = vmatprep.subr.bf16.mxu0 %v1731_v0  ;;  %v1909_v5 = vld [vmem:[%s2246_s2 + $0x8] sm:$0xff]  }
   0x3   :  { %v1733_v3 = vld [vmem:[%s2244_s0] sm:$0xff]   ;;  %1578 = vmatpush3.bf16.msra.mxu1 %v1895_v2  ;;  %1568 = vmatpush3.bf16.msra.mxu0 %v1731_v0 }
   0x4   :  { %1569 = vmatprep.mubr.msk.bf16.mxu0 %vm81_vm0, %v1733_v3  ;;  %1579 = vmatprep.subr.bf16.mxu1 %v1832_v1 }
   0x5   :  { %1593 = vmatprep.subr.bf16.mxu0 %v1832_v1 }
   0x6   :  { %1570 = vmatmul.mubr.msk.bf16.vlgmr.msra.gmra.mrb[0].mxu0 %vm81_vm0, %v1734_v4 }
   0x7   :  { %1580 = vmatpush3.bf16.msra.mxu1 %v1909_v5  ;;  %1594 = vmatpush3.bf16.msra.mxu0 %v1895_v2 }
   0x8   :  { %1585 = vmatprep.subr.bf16.mxu1 %v1832_v1  ;;  %1595 = vmatprep.subr.bf16.mxu0 %v1832_v1 }
   0xa   :  { %1582 = vmatmul.mubr.bf16.vlgmr.msra.gmra.mrb[0].mxu1 %v1834_v6 }
   0xb   :  { %14 = vsyncpa [#allocation3], 0  ;;  %1586 = vmatpush3.bf16.msra.mxu1 %v1895_v2  ;;  %1589 = vmatprep.mubr.msk.bf16.mxu1 %vm1833_vm1, %v1832_v1  ;;  %v1931_v7 = vld [vmem:[%s2247_s3] ss:$0 sm:$0xff]  ;;  %s1835_s19 = smov 64   ;;  %s1836_s3 = smov 32  }
   0xc   :  { %1587 = vmatprep.subr.bf16.mxu1 %v1832_v1  ;;  %1596 = vmatpush3.bf16.msra.mxu0 %v1909_v5  ;;  %vm171_vm2 = vcmask 261120   ;;  %v1736_v45 = vld [vmem:[%s2244_s0 + $0x10] sm:$0xff]   ;;  %v1737_v46 = vld [vmem:[%s2244_s0 + $0x18] sm:$0xff]   ;;  %s1837_s15 = smov [#allocation2]  }
   0xd   :  { %1609 = vmatprep.subr.bf16.mxu0 %v1832_v1  ;;  %1573 = vmatprep.mubr.msk.bf16.mxu0 %vm81_vm0, %v1736_v45 }
   0xe   :  { %1574 = vmatmul.mubr.msk.bf16.gmra.mrb[4].mxu0 %vm81_vm0, %v1737_v46 }
   0xf   :  { %1588 = vmatpush3.bf16.msra.mxu1 %v1909_v5  ;;  %1597 = vmatprep.mubr.msk.bf16.mxu0 %vm1833_vm1, %v1832_v1 }
  0x10   :  { %1601 = vmatprep.subr.bf16.mxu1 %v1832_v1 }
  0xd9   :  { %v1933_v8 = vpop.f32.mrb[0].mxu0 }
  0xda   :  { %v128_v9 = vpop.f32.mrb[1].mxu0  ;;  %v137_v56 = vadd.f32 %v1933_v8, %v1931_v7 }
  0xdb   :  { %v129_v10 = vadd.f32 %v1931_v7, %v128_v9  ;;  %v1936_v11 = vpop.f32.mrb[2].mxu0 }
  0xdc   :  { %v131_v12 = vpop.f32.mrb[3].mxu0 }
  0xdd   :  { %v209_v13 = vpop.f32.mrb[0].mxu1  ;;  %v132_v31 = vadd.f32 %v1931_v7, %v131_v12 }
  0xde   :  { %v215_v14 = vadd.f32 %v209_v13, %v129_v10  ;;  %v1583_v15 = vpop.f32.mrb[1].mxu1 }
  0xdf   :  { %v212_v16 = vpop.f32.mrb[2].mxu1 }
  0xe0   :  { %1744 = vtanh.f32 %v215_v14  ;;  %v1584_v17 = vpop.f32.mrb[3].mxu1 }
  0xe1   :  { %v1972_v51 = vpop.f32.mrb[4].mxu0  ;;  %v140_v17 = vadd.f32 %v1936_v11, %v1931_v7 }
  0xe2   :  { %v1974_v52 = vpop.f32.mrb[5].mxu0 }
  0xe3   :  { %v1976_v53 = vpop.f32.mrb[6].mxu0 }
  0xe4   :  { %v1978_v54 = vpop.f32.mrb[7].mxu0 }
  0xea   :  { %v1745_v18 = vpop.eup %1744 }
  0xeb   :  { %221 = vrot.lane.b32.xlu0 %v1745_v18, %s1835_s19  ;;  %v217_v19 = vmul.f32 0.5, %v1745_v18 }
  0xed   :  { %v218_v20 = vadd.f32 0.5, %v217_v19 }
  0xef   :  { %v219_v23 = vmul.f32 0.0, %v218_v20 }
 0x15d   :  { %v222_v21 = vpop.permute.xlu0 %221 }
 0x15e   :  { %v224_v22 = vmul.f32 %v222_v21, %v218_v20 }
 0x160   :  { %226 = vrot.lane.b32.xlu0 %v224_v22, %s1836_s3 }
 0x1d2   :  { %v227_v24 = vpop.permute.xlu0 %226 }
 0x1d3   :  { %v229_v25 = vadd.f32 %v227_v24, %v219_v23 }
 0x1d5   :  { %1746 = vtanh.f32 %v229_v25 }
 0x1df   :  { %v1747_v26 = vpop.eup %1746 }
 0x1e0   :  { %232 = vrot.lane.b32.xlu1 %v1747_v26, %s1835_s19 }
 0x252   :  { %v233_v27 = vpop.permute.xlu1 %232 }
 0x253   :  { %v1941_v28 = vmul.f32 %v233_v27, %v218_v20 }
 0x255   :  { %v236_v29 = vpack.c.bf16 %v1941_v28, %v1941_v28 }
 0x257   :  { %238 = vrot.lane.b32.xlu1 %v236_v29, %s1836_s3 }
 0x2c9   :  { %v239_v30 = vpop.permute.xlu1 %238 }
 0x2ca   :  { %1590 = vmatmul.mubr.msk.bf16.vlgmr.msra.gmra.mrb[4].mxu1 %vm171_vm2, %v239_v30 }
 0x2cb   :  { %1602 = vmatpush3.bf16.msra.mxu1 %v1895_v2  ;;  %1605 = vmatprep.mubr.msk.bf16.mxu1 %vm1833_vm1, %v1832_v1 }
 0x2cc   :  { %1603 = vmatprep.subr.bf16.mxu1 %v1832_v1 }
 0x2cf   :  { %1604 = vmatpush3.bf16.msra.mxu1 %v1909_v5 }
 0x2d0   :  { %1617 = vmatprep.subr.bf16.mxu1 %v1832_v1 }
 0x39d   :  { %v277_v32 = vpop.f32.mrb[4].mxu1 }
 0x39e   :  { %v283_v33 = vadd.f32 %v277_v32, %v132_v31  ;;  %v1591_v34 = vpop.f32.mrb[5].mxu1 }
 0x39f   :  { %v280_v35 = vpop.f32.mrb[6].mxu1 }
 0x3a0   :  { %1748 = vtanh.f32 %v283_v33  ;;  %v1592_v36 = vpop.f32.mrb[7].mxu1 }
 0x3a1   :  { %v145_v36 = vadd.f32 %v1931_v7, %v1974_v52 }
 0x3aa   :  { %v1749_v37 = vpop.eup %1748 }
 0x3ab   :  { %289 = vrot.lane.b32.xlu0 %v1749_v37, %s1835_s19  ;;  %v285_v38 = vmul.f32 0.5, %v1749_v37 }
 0x3ad   :  { %v286_v39 = vadd.f32 0.5, %v285_v38 }
 0x3af   :  { %v287_v42 = vmul.f32 %v286_v39, %v229_v25 }
 0x41d   :  { %v290_v40 = vpop.permute.xlu0 %289 }
 0x41e   :  { %v292_v41 = vmul.f32 %v290_v40, %v286_v39 }
 0x420   :  { %294 = vrot.lane.b32.xlu1 %v292_v41, %s1836_s3 }
 0x492   :  { %v295_v43 = vpop.permute.xlu1 %294 }
 0x493   :  { %v297_v44 = vadd.f32 %v295_v43, %v287_v42 }
 0x495   :  { %1750 = vtanh.f32 %v297_v44 }
 0x49f   :  { %v1751_v47 = vpop.eup %1750 }
 0x4a0   :  { %300 = vrot.lane.b32.xlu0 %v1751_v47, %s1835_s19 }
 0x512   :  { %v301_v48 = vpop.permute.xlu0 %300 }
 0x513   :  { %v1967_v49 = vmul.f32 %v301_v48, %v286_v39 }
 0x515   :  { %v304_v50 = vpack.c.bf16 %v1967_v49, %v1967_v49 }
 0x517   :  { %306 = vrot.lane.b32.xlu1 %v304_v50, %s1836_s3 }
 0x589   :  { %v307_v55 = vpop.permute.xlu1 %306 }
 0x58a   :  { %1598 = vmatmul.mubr.msk.bf16.vlgmr.msra.gmra.mrb[8].mxu0 %vm171_vm2, %v307_v55 }
 0x58b   :  { %1610 = vmatpush3.bf16.msra.mxu0 %v1895_v2  ;;  %1613 = vmatprep.mubr.msk.bf16.mxu0 %vm1833_vm1, %v1832_v1 }
 0x58c   :  { %1611 = vmatprep.subr.bf16.mxu0 %v1832_v1 }
 0x58f   :  { %1612 = vmatpush3.bf16.msra.mxu0 %v1909_v5 }
 0x590   :  { %1625 = vmatprep.subr.bf16.mxu0 %v1832_v1 }
 0x65d   :  { %v345_v57 = vpop.f32.mrb[8].mxu0 }
 0x65e   :  { %v351_v58 = vadd.f32 %v345_v57, %v137_v56  ;;  %v1599_v59 = vpop.f32.mrb[9].mxu0 }
 0x65f   :  { %v348_v60 = vpop.f32.mrb[10].mxu0  ;;  %v148_v59 = vadd.f32 %v1931_v7, %v1978_v54 }
 0x660   :  { %1752 = vtanh.f32 %v351_v58  ;;  %v1600_v61 = vpop.f32.mrb[11].mxu0 }
 0x66a   :  { %v1753_v62 = vpop.eup %1752 }
 0x66b   :  { %357 = vrot.lane.b32.xlu0 %v1753_v62, %s1835_s19  ;;  %v353_v63 = vmul.f32 0.5, %v1753_v62 }
 0x66d   :  { %v354_v0 = vadd.f32 0.5, %v353_v63 }
 0x66f   :  { %v355_v9 = vmul.f32 %v354_v0, %v297_v44 }
 0x6dd   :  { %v358_v3 = vpop.permute.xlu0 %357 }
 0x6de   :  { %v360_v4 = vmul.f32 %v358_v3, %v354_v0 }
 0x6e0   :  { %362 = vrot.lane.b32.xlu1 %v360_v4, %s1836_s3 }
 0x752   :  { %v363_v10 = vpop.permute.xlu1 %362 }
 0x753   :  { %v365_v12 = vadd.f32 %v363_v10, %v355_v9 }
 0x755   :  { %1754 = vtanh.f32 %v365_v12 }
 0x75f   :  { %v1755_v8 = vpop.eup %1754 }
 0x760   :  { %368 = vrot.lane.b32.xlu0 %v1755_v8, %s1835_s19 }
 0x7d2   :  { %v369_v13 = vpop.permute.xlu0 %368 }
 0x7d3   :  { %v1992_v14 = vmul.f32 %v369_v13, %v354_v0 }
 0x7d5   :  { %v372_v15 = vpack.c.bf16 %v1992_v14, %v1992_v14 }
 0x7d7   :  { %374 = vrot.lane.b32.xlu1 %v372_v15, %s1836_s3 }
 0x849   :  { %v375_v16 = vpop.permute.xlu1 %374 }
 0x84a   :  { %1606 = vmatmul.mubr.msk.bf16.vlgmr.msra.gmra.mrb[8].mxu1 %vm171_vm2, %v375_v16 }
 0x84b   :  { %1618 = vmatpush3.bf16.msra.mxu1 %v1895_v2  ;;  %1621 = vmatprep.mubr.msk.bf16.mxu1 %vm1833_vm1, %v1832_v1 }
 0x84c   :  { %1619 = vmatprep.subr.bf16.mxu1 %v1832_v1 }
 0x84f   :  { %1620 = vmatpush3.bf16.msra.mxu1 %v1909_v5 }
 0x850   :  { %1633 = vmatprep.subr.bf16.mxu1 %v1832_v1 }
 0x91d   :  { %v413_v18 = vpop.f32.mrb[8].mxu1 }
 0x91e   :  { %v419_v19 = vadd.f32 %v413_v18, %v140_v17  ;;  %v1607_v20 = vpop.f32.mrb[9].mxu1  ;;  %v153_v18 = vadd.f32 %v1972_v51, %v1931_v7  ;;  %v1738_v51 = vld [vmem:[%s2248_s4] sm:$0xff]  }
 0x91f   :  { %v416_v21 = vpop.f32.mrb[10].mxu1 }
 0x920   :  { %1756 = vtanh.f32 %v419_v19  ;;  %v1608_v22 = vpop.f32.mrb[11].mxu1 }
 0x92a   :  { %v1757_v23 = vpop.eup %1756 }
 0x92b   :  { %425 = vrot.lane.b32.xlu0 %v1757_v23, %s1835_s19  ;;  %v421_v24 = vmul.f32 0.5, %v1757_v23 }
 0x92d   :  { %v422_v25 = vadd.f32 0.5, %v421_v24 }
 0x92f   :  { %v423_v29 = vmul.f32 %v422_v25, %v365_v12 }
 0x99d   :  { %v426_v26 = vpop.permute.xlu0 %425 }
 0x99e   :  { %v428_v27 = vmul.f32 %v426_v26, %v422_v25 }
 0x9a0   :  { %430 = vrot.lane.b32.xlu1 %v428_v27, %s1836_s3 }
 0xa12   :  { %v431_v30 = vpop.permute.xlu1 %430 }
 0xa13   :  { %v433_v31 = vadd.f32 %v431_v30, %v423_v29 }
 0xa15   :  { %1758 = vtanh.f32 %v433_v31 }
 0xa1f   :  { %v1759_v11 = vpop.eup %1758 }
 0xa20   :  { %436 = vrot.lane.b32.xlu0 %v1759_v11, %s1835_s19 }
 0xa92   :  { %v437_v32 = vpop.permute.xlu0 %436 }
 0xa93   :  { %v2009_v33 = vmul.f32 %v437_v32, %v422_v25 }
 0xa95   :  { %v440_v34 = vpack.c.bf16 %v2009_v33, %v2009_v33 }
 0xa97   :  { %442 = vrot.lane.b32.xlu1 %v440_v34, %s1836_s3  ;;  %v712_v34 = vpack.c.bf16 %v1967_v49, %v1941_v28  ;;  %v713_v28 = vpack.c.bf16 %v2009_v33, %v1992_v14  ;;  %v2078_v49 = vld [vmem:[%s2249_s5] sm:$0xff]   ;;  %v156_v33 = vadd.f32 %v1976_v53, %v1931_v7 }
 0xb09   :  { %v443_v35 = vpop.permute.xlu1 %442 }
 0xb0a   :  { %1614 = vmatmul.mubr.msk.bf16.vlgmr.msra.gmra.mrb[12].mxu0 %vm171_vm2, %v443_v35  ;;  %v1739_v35 = vld [vmem:[%s2248_s4 + $0x8] sm:$0xff]  }
 0xb0b   :  { %1626 = vmatpush3.bf16.msra.mxu0 %v1895_v2  ;;  %1629 = vmatprep.mubr.msk.bf16.mxu0 %vm1833_vm1, %v1832_v1 }
 0xb0c   :  { %1627 = vmatprep.subr.bf16.mxu0 %v1832_v1 }
 0xb0f   :  { %1628 = vmatpush3.bf16.msra.mxu0 %v1909_v5 }
 0xb10   :  { %1641 = vmatprep.subr.bf16.mxu0 %v1738_v51 }
 0xbdd   :  { %v481_v37 = vpop.f32.mrb[12].mxu0 }
 0xbde   :  { %v487_v38 = vadd.f32 %v481_v37, %v145_v36  ;;  %v1615_v39 = vpop.f32.mrb[13].mxu0 }
 0xbdf   :  { %v484_v40 = vpop.f32.mrb[14].mxu0 }
 0xbe0   :  { %1760 = vtanh.f32 %v487_v38  ;;  %v1616_v41 = vpop.f32.mrb[15].mxu0 }
 0xbe1   :  { %v2085_v41 = vld [vmem:[%s2249_s5 + $0x8] sm:$0xff]  }
 0xbea   :  { %v1761_v42 = vpop.eup %1760 }
 0xbeb   :  { %493 = vrot.lane.b32.xlu0 %v1761_v42, %s1835_s19  ;;  %v489_v43 = vmul.f32 0.5, %v1761_v42 }
 0xbed   :  { %v490_v44 = vadd.f32 0.5, %v489_v43 }
 0xbef   :  { %v491_v47 = vmul.f32 %v490_v44, %v433_v31 }
 0xc5d   :  { %v494_v45 = vpop.permute.xlu0 %493 }
 0xc5e   :  { %v496_v46 = vmul.f32 %v494_v45, %v490_v44 }
 0xc60   :  { %498 = vrot.lane.b32.xlu1 %v496_v46, %s1836_s3  ;;  %v2109_v46 = vld [vmem:[%s2250_s6] ss:$0 sm:$0xff] }
 0xcd2   :  { %v499_v48 = vpop.permute.xlu1 %498 }
 0xcd3   :  { %v501_v50 = vadd.f32 %v499_v48, %v491_v47 }
 0xcd5   :  { %1762 = vtanh.f32 %v501_v50 }
 0xcdf   :  { %v1763_v52 = vpop.eup %1762 }
 0xce0   :  { %504 = vrot.lane.b32.xlu0 %v1763_v52, %s1835_s19 }
 0xd52   :  { %v505_v55 = vpop.permute.xlu0 %504 }
 0xd53   :  { %v2025_v56 = vmul.f32 %v505_v55, %v490_v44 }
 0xd55   :  { %v508_v57 = vpack.c.bf16 %v2025_v56, %v2025_v56 }
 0xd57   :  { %510 = vrot.lane.b32.xlu1 %v508_v57, %s1836_s3 }
 0xdc9   :  { %v511_v58 = vpop.permute.xlu1 %510 }
 0xdca   :  { %1622 = vmatmul.mubr.msk.bf16.vlgmr.msra.gmra.mrb[12].mxu1 %vm171_vm2, %v511_v58 }
 0xdcb   :  { %1634 = vmatpush3.bf16.msra.mxu1 %v1895_v2  ;;  %1637 = vmatprep.mubr.msk.bf16.mxu1 %vm1833_vm1, %v1832_v1 }
 0xdcc   :  { %1635 = vmatprep.subr.bf16.mxu1 %v1832_v1 }
 0xdcf   :  { %1636 = vmatpush3.bf16.msra.mxu1 %v1909_v5 }
 0xdd0   :  { %1653 = vmatprep.subr.bf16.mxu1 %v1832_v1 }
 0xe9d   :  { %v549_v60 = vpop.f32.mrb[12].mxu1 }
 0xe9e   :  { %v555_v61 = vadd.f32 %v549_v60, %v148_v59  ;;  %v1623_v62 = vpop.f32.mrb[13].mxu1 }
 0xe9f   :  { %v552_v63 = vpop.f32.mrb[14].mxu1 }
 0xea0   :  { %1764 = vtanh.f32 %v555_v61  ;;  %v1624_v0 = vpop.f32.mrb[15].mxu1 }
 0xeaa   :  { %v1765_v3 = vpop.eup %1764 }
 0xeab   :  { %561 = vrot.lane.b32.xlu0 %v1765_v3, %s1835_s19  ;;  %v557_v2 = vmul.f32 0.5, %v1765_v3 }
 0xead   :  { %v558_v4 = vadd.f32 0.5, %v557_v2 }
 0xeaf   :  { %v559_v5 = vmul.f32 %v558_v4, %v501_v50 }
 0xf1d   :  { %v562_v9 = vpop.permute.xlu0 %561 }
 0xf1e   :  { %v564_v10 = vmul.f32 %v562_v9, %v558_v4 }
 0xf20   :  { %566 = vrot.lane.b32.xlu1 %v564_v10, %s1836_s3 }
 0xf92   :  { %v567_v12 = vpop.permute.xlu1 %566 }
 0xf93   :  { %v569_v8 = vadd.f32 %v567_v12, %v559_v5 }
 0xf95   :  { %1766 = vtanh.f32 %v569_v8 }
 0xf9f   :  { %v1767_v54 = vpop.eup %1766 }
 0xfa0   :  { %572 = vrot.lane.b32.xlu0 %v1767_v54, %s1835_s19 }
0x1012   :  { %v573_v13 = vpop.permute.xlu0 %572 }
0x1013   :  { %v2042_v15 = vmul.f32 %v573_v13, %v558_v4 }
0x1015   :  { %v576_v16 = vpack.c.bf16 %v2042_v15, %v2042_v15 }
0x1017   :  { %578 = vrot.lane.b32.xlu1 %v576_v16, %s1836_s3 }
0x1089   :  { %v579_v17 = vpop.permute.xlu1 %578 }
0x108a   :  { %1630 = vmatmul.mubr.msk.bf16.vlgmr.msra.gmra.mrb[16].mxu0 %vm171_vm2, %v579_v17 }
0x108b   :  { %1642 = vmatpush3.bf16.msra.mxu0 %v1738_v51 }
0x108c   :  { %1643 = vmatprep.subr.bf16.mxu0 %v1739_v35 }
0x108f   :  { %1644 = vmatpush3.bf16.msra.mxu0 %v1739_v35 }
0x1090   :  { %1669 = vmatprep.subr.bf16.mxu0 %v1832_v1 }
0x115d   :  { %v617_v19 = vpop.f32.mrb[16].mxu0 }
0x115e   :  { %v623_v20 = vadd.f32 %v617_v19, %v153_v18  ;;  %v1631_v21 = vpop.f32.mrb[17].mxu0 }
0x115f   :  { %v620_v22 = vpop.f32.mrb[18].mxu0 }
0x1160   :  { %1768 = vtanh.f32 %v623_v20  ;;  %v1632_v23 = vpop.f32.mrb[19].mxu0 }
0x1161   :  { %v714_v23 = vpack.c.bf16 %v2042_v15, %v2025_v56 }
0x116a   :  { %v1769_v24 = vpop.eup %1768 }
0x116b   :  { %629 = vrot.lane.b32.xlu0 %v1769_v24, %s1835_s19  ;;  %v625_v25 = vmul.f32 0.5, %v1769_v24 }
0x116d   :  { %v626_v26 = vadd.f32 0.5, %v625_v25 }
0x116f   :  { %v627_v30 = vmul.f32 %v626_v26, %v569_v8 }
0x11dd   :  { %v630_v27 = vpop.permute.xlu0 %629 }
0x11de   :  { %v632_v29 = vmul.f32 %v630_v27, %v626_v26 }
0x11e0   :  { %634 = vrot.lane.b32.xlu1 %v632_v29, %s1836_s3 }
0x1252   :  { %v635_v31 = vpop.permute.xlu1 %634 }
0x1253   :  { %v2052_v11 = vadd.f32 %v635_v31, %v627_v30 }
0x1255   :  { %1770 = vtanh.f32 %v2052_v11 }
0x125f   :  { %v1771_v32 = vpop.eup %1770 }
0x1260   :  { %640 = vrot.lane.b32.xlu0 %v1771_v32, %s1835_s19 }
0x1264   :  { %735 = vrot.lane.b32.xlu0 %v712_v34, %s1836_s3 }
0x12d2   :  { %v641_v36 = vpop.permute.xlu0 %640 }
0x12d3   :  { %v2066_v37 = vmul.f32 %v641_v36, %v626_v26 }
0x12d5   :  { %v644_v38 = vpack.c.bf16 %v2066_v37, %v2066_v37 }
0x12d6   :  { %v736_v39 = vpop.permute.xlu0 %735 }
0x12d7   :  { %646 = vrot.lane.b32.xlu1 %v644_v38, %s1836_s3  ;;  %1645 = vmatprep.mubr.msk.bf16.mxu0 %vm171_vm2, %v736_v39 }
0x12db   :  { %737 = vrot.lane.b32.xlu1 %v713_v28, %s1836_s3 }
0x1349   :  { %v647_v40 = vpop.permute.xlu1 %646 }
0x134a   :  { %1638 = vmatmul.mubr.msk.bf16.vlgmr.msra.gmra.mrb[16].mxu1 %vm171_vm2, %v647_v40 }
0x134b   :  { %1654 = vmatpush3.bf16.msra.mxu1 %v2078_v49  ;;  %1657 = vmatprep.mubr.msk.bf16.mxu1 %vm1833_vm1, %v1832_v1 }
0x134c   :  { %1655 = vmatprep.subr.bf16.mxu1 %v1832_v1 }
0x134d   :  { %v738_v14 = vpop.permute.xlu1 %737 }
0x134e   :  { %1646 = vmatmul.mubr.msk.bf16.vlgmr.msra.gmra.mrb[20].mxu0 %vm171_vm2, %v738_v14 }
0x134f   :  { %1656 = vmatpush3.bf16.msra.mxu1 %v2085_v41  ;;  %1670 = vmatpush3.bf16.msra.mxu0 %v2078_v49 }
0x1350   :  { %1661 = vmatprep.subr.bf16.mxu1 %v1832_v1  ;;  %1671 = vmatprep.subr.bf16.mxu0 %v1832_v1 }
0x1352   :  { %1658 = vmatmul.mubr.bf16.vlgmr.msra.gmra.mrb[20].mxu1 %v1834_v6 }
0x1353   :  { %1662 = vmatpush3.bf16.msra.mxu1 %v2078_v49  ;;  %1665 = vmatprep.mubr.msk.bf16.mxu1 %vm1833_vm1, %v1832_v1 }
0x1354   :  { %1663 = vmatprep.subr.bf16.mxu1 %v1832_v1  ;;  %1672 = vmatpush3.bf16.msra.mxu0 %v2085_v41 }
0x1355   :  { %1685 = vmatprep.subr.bf16.mxu0 %v1832_v1 }
0x1357   :  { %1664 = vmatpush3.bf16.msra.mxu1 %v2085_v41 }
0x1358   :  { %1677 = vmatprep.subr.bf16.mxu1 %v1832_v1 }
0x141d   :  { %v685_v42 = vpop.f32.mrb[16].mxu1 }
0x141e   :  { %v691_v6 = vadd.f32 %v685_v42, %v156_v33  ;;  %v1639_v43 = vpop.f32.mrb[17].mxu1 }
0x141f   :  { %v688_v44 = vpop.f32.mrb[18].mxu1 }
0x1420   :  { %v1640_v45 = vpop.f32.mrb[19].mxu1 }
0x1421   :  { %v2111_v47 = vpop.f32.mrb[20].mxu0 }
0x1422   :  { %v801_v48 = vpop.f32.mrb[21].mxu0 }
0x1423   :  { %v802_v50 = vadd.f32 %v2109_v46, %v801_v48  ;;  %v2114_v52 = vpop.f32.mrb[22].mxu0 }
0x1424   :  { %v804_v55 = vpop.f32.mrb[23].mxu0 }
0x1425   :  { %v878_v57 = vpop.f32.mrb[20].mxu1  ;;  %v805_v26 = vadd.f32 %v2109_v46, %v804_v55 }
0x1426   :  { %v884_v7 = vadd.f32 %v878_v57, %v802_v50  ;;  %v1659_v53 = vpop.f32.mrb[21].mxu1  ;;  %v810_v50 = vadd.f32 %v2111_v47, %v2109_v46 }
0x1427   :  { %v881_v58 = vpop.f32.mrb[22].mxu1 }
0x1428   :  { %1772 = vtanh.f32 %v884_v7  ;;  %v1660_v59 = vpop.f32.mrb[23].mxu1 }
0x1432   :  { %v1773_v60 = vpop.eup %1772 }
0x1433   :  { %890 = vrot.lane.b32.xlu0 %v1773_v60, %s1835_s19  ;;  %v886_v61 = vmul.f32 0.5, %v1773_v60 }
0x1435   :  { %v887_v62 = vadd.f32 0.5, %v886_v61 }
0x1437   :  { %v888_v3 = vmul.f32 0.0, %v887_v62 }
0x14a5   :  { %v891_v63 = vpop.permute.xlu0 %890 }
0x14a6   :  { %v893_v0 = vmul.f32 %v891_v63, %v887_v62 }
0x14a8   :  { %895 = vrot.lane.b32.xlu1 %v893_v0, %s1836_s3 }
0x151a   :  { %v896_v2 = vpop.permute.xlu1 %895 }
0x151b   :  { %v898_v4 = vadd.f32 %v896_v2, %v888_v3 }
0x151d   :  { %1774 = vtanh.f32 %v898_v4 }
0x151e   :  { %1776 = vtanh.f32 %v691_v6 }
0x1527   :  { %v1775_v9 = vpop.eup %1774 }
0x1528   :  { %901 = vrot.lane.b32.xlu0 %v1775_v9, %s1835_s19  ;;  %v1777_v10 = vpop.eup %1776 }
0x1529   :  { %v693_v5 = vmul.f32 0.5, %v1777_v10 }
0x152b   :  { %v694_v13 = vadd.f32 0.5, %v693_v5 }
0x152c   :  { %697 = vrot.lane.b32.xlu0 %v1777_v10, %s1835_s19 }
0x152d   :  { %v695_v19 = vmul.f32 %v694_v13, %v2052_v11 }
0x159a   :  { %v902_v12 = vpop.permute.xlu0 %901 }
0x159b   :  { %v904_v8 = vmul.f32 %v902_v12, %v887_v62  ;;  %v813_v12 = vadd.f32 %v2114_v52, %v2109_v46 }
0x159d   :  { %v905_v54 = vpack.c.bf16 %v904_v8, %v904_v8 }
0x159e   :  { %v698_v16 = vpop.permute.xlu0 %697 }
0x159f   :  { %v700_v17 = vmul.f32 %v698_v16, %v694_v13  ;;  %907 = vrot.lane.b32.xlu1 %v905_v54, %s1836_s3 }
0x15a1   :  { %702 = vrot.lane.b32.xlu0 %v700_v17, %s1836_s3 }
0x1611   :  { %v908_v18 = vpop.permute.xlu1 %907 }
0x1612   :  { %1666 = vmatmul.mubr.msk.bf16.vlgmr.msra.gmra.mrb[24].mxu1 %vm171_vm2, %v908_v18 }
0x1613   :  { %v703_v20 = vpop.permute.xlu0 %702  ;;  %1678 = vmatpush3.bf16.msra.mxu1 %v2078_v49  ;;  %1681 = vmatprep.mubr.msk.bf16.mxu1 %vm1833_vm1, %v1832_v1 }
0x1614   :  { %v705_v21 = vadd.f32 %v703_v20, %v695_v19  ;;  %1679 = vmatprep.subr.bf16.mxu1 %v1832_v1 }
0x1616   :  { %1778 = vtanh.f32 %v705_v21 }
0x1617   :  { %1680 = vmatpush3.bf16.msra.mxu1 %v2085_v41 }
0x1618   :  { %1693 = vmatprep.subr.bf16.mxu1 %v1832_v1 }
0x1620   :  { %v1779_v22 = vpop.eup %1778 }
0x1621   :  { %708 = vrot.lane.b32.xlu0 %v1779_v22, %s1835_s19 }
0x1625   :  { %739 = vrot.lane.b32.xlu0 %v714_v23, %s1836_s3 }
0x1693   :  { %v709_v24 = vpop.permute.xlu0 %708 }
0x1694   :  { %v711_v39 = vmul.f32 %v709_v24, %v694_v13 }
0x1696   :  { %v715_v40 = vpack.c.bf16 %v711_v39, %v2066_v37 }
0x1697   :  { %v740_v25 = vpop.permute.xlu0 %739 }
0x1698   :  { %1649 = vmatprep.mubr.msk.bf16.mxu0 %vm171_vm2, %v740_v25 }
0x16e5   :  { %v946_v27 = vpop.f32.mrb[24].mxu1 }
0x16e6   :  { %v952_v29 = vadd.f32 %v946_v27, %v805_v26  ;;  %v1667_v30 = vpop.f32.mrb[25].mxu1 }
0x16e7   :  { %v949_v31 = vpop.f32.mrb[26].mxu1 }
0x16e8   :  { %1780 = vtanh.f32 %v952_v29  ;;  %v1668_v11 = vpop.f32.mrb[27].mxu1 }
0x16f2   :  { %v1781_v51 = vpop.eup %1780 }
0x16f3   :  { %958 = vrot.lane.b32.xlu1 %v1781_v51, %s1835_s19  ;;  %v954_v32 = vmul.f32 0.5, %v1781_v51 }
0x16f5   :  { %v955_v34 = vadd.f32 0.5, %v954_v32 }
0x16f7   :  { %v956_v35 = vmul.f32 %v955_v34, %v898_v4 }
0x1765   :  { %v959_v56 = vpop.permute.xlu1 %958 }
0x1766   :  { %v961_v15 = vmul.f32 %v959_v56, %v955_v34 }
0x1768   :  { %963 = vrot.lane.b32.xlu1 %v961_v15, %s1836_s3 }
0x17da   :  { %v964_v36 = vpop.permute.xlu1 %963 }
0x17db   :  { %v966_v38 = vadd.f32 %v964_v36, %v956_v35 }
0x17dd   :  { %1782 = vtanh.f32 %v966_v38 }
0x17e7   :  { %v1783_v28 = vpop.eup %1782 }
0x17e8   :  { %969 = vrot.lane.b32.xlu1 %v1783_v28, %s1835_s19 }
0x17ec   :  { %741 = vrot.lane.b32.xlu1 %v715_v40, %s1836_s3 }
0x185a   :  { %v970_v14 = vpop.permute.xlu1 %969 }
0x185b   :  { %v972_v33 = vmul.f32 %v970_v14, %v955_v34 }
0x185d   :  { %v973_v42 = vpack.c.bf16 %v972_v33, %v972_v33 }
0x185e   :  { %v742_v6 = vpop.permute.xlu1 %741 }
0x185f   :  { %975 = vrot.lane.b32.xlu0 %v973_v42, %s1836_s3  ;;  %1650 = vmatmul.mubr.msk.bf16.gmra.mrb[24].mxu0 %vm171_vm2, %v742_v6 }
0x1860   :  { %1673 = vmatprep.mubr.msk.bf16.mxu0 %vm1833_vm1, %v1832_v1 }
0x18d1   :  { %v976_v43 = vpop.permute.xlu0 %975 }
0x18d2   :  { %1674 = vmatmul.mubr.msk.bf16.vlgmr.msra.gmra.mrb[28].mxu0 %vm171_vm2, %v976_v43 }
0x18d3   :  { %1686 = vmatpush3.bf16.msra.mxu0 %v2078_v49  ;;  %1689 = vmatprep.mubr.msk.bf16.mxu0 %vm1833_vm1, %v1832_v1 }
0x18d4   :  { %1687 = vmatprep.subr.bf16.mxu0 %v1832_v1 }
0x18d7   :  { %1688 = vmatpush3.bf16.msra.mxu0 %v2085_v41 }
0x18d8   :  { %1701 = vmatprep.subr.bf16.mxu0 %v1832_v1 }
0x1932   :  { %v2152_v37 = vpop.f32.mrb[24].mxu0 }
0x1933   :  { %v2154_v44 = vpop.f32.mrb[25].mxu0 }
0x1934   :  { %v2156_v45 = vpop.f32.mrb[26].mxu0  ;;  %v818_v31 = vadd.f32 %v2109_v46, %v2154_v44 }
0x1935   :  { %v2158_v48 = vpop.f32.mrb[27].mxu0 }
0x19a5   :  { %v1014_v55 = vpop.f32.mrb[28].mxu0 }
0x19a6   :  { %v1020_v57 = vadd.f32 %v1014_v55, %v810_v50  ;;  %v1675_v7 = vpop.f32.mrb[29].mxu0  ;;  %v821_v50 = vadd.f32 %v2109_v46, %v2158_v48 }
0x19a7   :  { %v1017_v53 = vpop.f32.mrb[30].mxu0 }
0x19a8   :  { %1784 = vtanh.f32 %v1020_v57  ;;  %v1676_v58 = vpop.f32.mrb[31].mxu0 }
0x19b2   :  { %v1785_v59 = vpop.eup %1784 }
0x19b3   :  { %1026 = vrot.lane.b32.xlu1 %v1785_v59, %s1835_s19  ;;  %v1022_v60 = vmul.f32 0.5, %v1785_v59 }
0x19b5   :  { %v1023_v61 = vadd.f32 0.5, %v1022_v60 }
0x19b7   :  { %v1024_v0 = vmul.f32 %v1023_v61, %v966_v38 }
0x1a25   :  { %v1027_v62 = vpop.permute.xlu1 %1026 }
0x1a26   :  { %v1029_v63 = vmul.f32 %v1027_v62, %v1023_v61 }
0x1a28   :  { %1031 = vrot.lane.b32.xlu0 %v1029_v63, %s1836_s3 }
0x1a9a   :  { %v1032_v3 = vpop.permute.xlu0 %1031 }
0x1a9b   :  { %v1034_v2 = vadd.f32 %v1032_v3, %v1024_v0 }
0x1a9d   :  { %1786 = vtanh.f32 %v1034_v2 }
0x1aa7   :  { %v1787_v47 = vpop.eup %1786 }
0x1aa8   :  { %1037 = vrot.lane.b32.xlu1 %v1787_v47, %s1835_s19 }
0x1b1a   :  { %v1038_v4 = vpop.permute.xlu1 %1037 }
0x1b1b   :  { %v1040_v9 = vmul.f32 %v1038_v4, %v1023_v61 }
0x1b1d   :  { %v1041_v10 = vpack.c.bf16 %v1040_v9, %v1040_v9  ;;  %v826_v9 = vadd.f32 %v2152_v37, %v2109_v46 }
0x1b1f   :  { %1043 = vrot.lane.b32.xlu0 %v1041_v10, %s1836_s3 }
0x1b91   :  { %v1044_v5 = vpop.permute.xlu0 %1043 }
0x1b92   :  { %1682 = vmatmul.mubr.msk.bf16.vlgmr.msra.gmra.mrb[28].mxu1 %vm171_vm2, %v1044_v5 }
0x1b93   :  { %1694 = vmatpush3.bf16.msra.mxu1 %v2078_v49  ;;  %1697 = vmatprep.mubr.msk.bf16.mxu1 %vm1833_vm1, %v1832_v1 }
0x1b94   :  { %1695 = vmatprep.subr.bf16.mxu1 %v1832_v1 }
0x1b97   :  { %1696 = vmatpush3.bf16.msra.mxu1 %v2085_v41 }
0x1b98   :  { %1709 = vmatprep.subr.bf16.mxu1 %v1832_v1 }
0x1c65   :  { %v1082_v8 = vpop.f32.mrb[28].mxu1 }
0x1c66   :  { %v1088_v54 = vadd.f32 %v1082_v8, %v813_v12  ;;  %v1683_v13 = vpop.f32.mrb[29].mxu1 }
0x1c67   :  { %v1085_v16 = vpop.f32.mrb[30].mxu1 }
0x1c68   :  { %1788 = vtanh.f32 %v1088_v54  ;;  %v1684_v17 = vpop.f32.mrb[31].mxu1 }
0x1c72   :  { %v1789_v18 = vpop.eup %1788 }
0x1c73   :  { %1094 = vrot.lane.b32.xlu1 %v1789_v18, %s1835_s19  ;;  %v1090_v19 = vmul.f32 0.5, %v1789_v18 }
0x1c75   :  { %v1091_v20 = vadd.f32 0.5, %v1090_v19 }
0x1c77   :  { %v1092_v23 = vmul.f32 %v1091_v20, %v1034_v2 }
0x1ce5   :  { %v1095_v21 = vpop.permute.xlu1 %1094 }
0x1ce6   :  { %v1097_v22 = vmul.f32 %v1095_v21, %v1091_v20 }
0x1ce8   :  { %1099 = vrot.lane.b32.xlu0 %v1097_v22, %s1836_s3 }
0x1d5a   :  { %v1100_v24 = vpop.permute.xlu0 %1099 }
0x1d5b   :  { %v1102_v25 = vadd.f32 %v1100_v24, %v1092_v23 }
0x1d5d   :  { %1790 = vtanh.f32 %v1102_v25 }
0x1d67   :  { %v1791_v52 = vpop.eup %1790 }
0x1d68   :  { %1105 = vrot.lane.b32.xlu1 %v1791_v52, %s1835_s19 }
0x1dda   :  { %v1106_v26 = vpop.permute.xlu1 %1105 }
0x1ddb   :  { %v1108_v27 = vmul.f32 %v1106_v26, %v1091_v20  ;;  %v829_v26 = vadd.f32 %v2156_v45, %v2109_v46  ;;  %v1742_v46 = vld [vmem:[%s2251_s7] sm:$0xff]   ;;  %v1743_v45 = vld [vmem:[%s2251_s7 + $0x8] sm:$0xff]   ;;  %s1458_s7 = sshll.u32 %s1837_s15, 4  ;;  %s1459_s7 = int_to_ptr.vmem [resolvable:$true] %s1458_s7 }
0x1ddc   :  { %s1808_s16 = scalar_lea.vmem %s1459_s7, 128  ;;  %p1813_p1 = scmp.lt.s32.totalorder %s1459_s7, %s1459_s7 }
0x1ddd   :  { %v1109_v29 = vpack.c.bf16 %v1108_v27, %v1108_v27  ;;  %p1809_p0 = scmp.ne.s32.totalorder %s1459_s7, %s1808_s16  ;;  %p1814_p2 = scmp.lt.s32.totalorder %s1808_s16, %s1808_s16 }
0x1ddf   :  { %1111 = vrot.lane.b32.xlu0 %v1109_v29, %s1836_s3  ;;  %p1815_p3 = por %p1814_p2, %p1813_p1 }
0x1de1   :  { %p1816_p4 = pnand %p1815_p3, %p1809_p0 }
0x1e51   :  { %v1112_v30 = vpop.permute.xlu0 %1111 }
0x1e52   :  { %1690 = vmatmul.mubr.msk.bf16.vlgmr.msra.gmra.mrb[32].mxu0 %vm171_vm2, %v1112_v30 }
0x1e53   :  { %1702 = vmatpush3.bf16.msra.mxu0 %v2078_v49  ;;  %1705 = vmatprep.mubr.msk.bf16.mxu0 %vm1833_vm1, %v1832_v1 }
0x1e54   :  { %1703 = vmatprep.subr.bf16.mxu0 %v1832_v1 }
0x1e57   :  { %1704 = vmatpush3.bf16.msra.mxu0 %v2085_v41 }
0x1e58   :  { %1717 = vmatprep.subr.bf16.mxu0 %v1832_v1 }
0x1f25   :  { %v1150_v11 = vpop.f32.mrb[32].mxu0 }
0x1f26   :  { %v1156_v51 = vadd.f32 %v1150_v11, %v818_v31  ;;  %v1691_v32 = vpop.f32.mrb[33].mxu0 }
0x1f27   :  { %v1153_v34 = vpop.f32.mrb[34].mxu0 }
0x1f28   :  { %1792 = vtanh.f32 %v1156_v51  ;;  %v1692_v56 = vpop.f32.mrb[35].mxu0 }
0x1f32   :  { %v1793_v15 = vpop.eup %1792 }
0x1f33   :  { %1162 = vrot.lane.b32.xlu1 %v1793_v15, %s1835_s19  ;;  %v1158_v35 = vmul.f32 0.5, %v1793_v15 }
0x1f35   :  { %v1159_v36 = vadd.f32 0.5, %v1158_v35 }
0x1f37   :  { %v1160_v28 = vmul.f32 %v1159_v36, %v1102_v25 }
0x1fa5   :  { %v1163_v38 = vpop.permute.xlu1 %1162 }
0x1fa6   :  { %v1165_v39 = vmul.f32 %v1163_v38, %v1159_v36 }
0x1fa8   :  { %1167 = vrot.lane.b32.xlu0 %v1165_v39, %s1836_s3 }
0x201a   :  { %v1168_v40 = vpop.permute.xlu0 %1167 }
0x201b   :  { %v1170_v14 = vadd.f32 %v1168_v40, %v1160_v28 }
0x201d   :  { %1794 = vtanh.f32 %v1170_v14 }
0x2027   :  { %v1795_v33 = vpop.eup %1794 }
0x2028   :  { %1173 = vrot.lane.b32.xlu1 %v1795_v33, %s1835_s19 }
0x209a   :  { %v1174_v42 = vpop.permute.xlu1 %1173 }
0x209b   :  { %v1176_v6 = vmul.f32 %v1174_v42, %v1159_v36  ;;  %v1501_v42 = vld [vmem:[%s2252_s8] ss:$0 sm:$0xff] }
0x209d   :  { %v1177_v43 = vpack.c.bf16 %v1176_v6, %v1176_v6 }
0x209f   :  { %1179 = vrot.lane.b32.xlu0 %v1177_v43, %s1836_s3 }
0x2111   :  { %v1180_v44 = vpop.permute.xlu0 %1179 }
0x2112   :  { %1698 = vmatmul.mubr.msk.bf16.vlgmr.msra.gmra.mrb[32].mxu1 %vm171_vm2, %v1180_v44 }
0x2113   :  { %1710 = vmatpush3.bf16.msra.mxu1 %v2078_v49  ;;  %1713 = vmatprep.mubr.msk.bf16.mxu1 %vm1833_vm1, %v1832_v1 }
0x2114   :  { %1711 = vmatprep.subr.bf16.mxu1 %v1832_v1 }
0x2117   :  { %1712 = vmatpush3.bf16.msra.mxu1 %v2085_v41 }
0x21e5   :  { %v1218_v55 = vpop.f32.mrb[32].mxu1 }
0x21e6   :  { %v1224_v57 = vadd.f32 %v1218_v55, %v821_v50  ;;  %v1699_v7 = vpop.f32.mrb[33].mxu1 }
0x21e7   :  { %v1221_v53 = vpop.f32.mrb[34].mxu1 }
0x21e8   :  { %1796 = vtanh.f32 %v1224_v57  ;;  %v1700_v58 = vpop.f32.mrb[35].mxu1 }
0x21f2   :  { %v1797_v59 = vpop.eup %1796 }
0x21f3   :  { %1230 = vrot.lane.b32.xlu1 %v1797_v59, %s1835_s19  ;;  %v1226_v49 = vmul.f32 0.5, %v1797_v59 }
0x21f5   :  { %v1227_v60 = vadd.f32 0.5, %v1226_v49 }
0x21f7   :  { %v1228_v63 = vmul.f32 %v1227_v60, %v1170_v14 }
0x2265   :  { %v1231_v61 = vpop.permute.xlu1 %1230 }
0x2266   :  { %v1233_v62 = vmul.f32 %v1231_v61, %v1227_v60 }
0x2268   :  { %1235 = vrot.lane.b32.xlu0 %v1233_v62, %s1836_s3 }
0x22da   :  { %v1236_v41 = vpop.permute.xlu0 %1235 }
0x22db   :  { %v1238_v0 = vadd.f32 %v1236_v41, %v1228_v63 }
0x22dd   :  { %1798 = vtanh.f32 %v1238_v0 }
0x22e7   :  { %v1799_v48 = vpop.eup %1798 }
0x22e8   :  { %1241 = vrot.lane.b32.xlu1 %v1799_v48, %s1835_s19 }
0x235a   :  { %v1242_v3 = vpop.permute.xlu1 %1241 }
0x235b   :  { %v1244_v2 = vmul.f32 %v1242_v3, %v1227_v60 }
0x235d   :  { %v1245_v47 = vpack.c.bf16 %v1244_v2, %v1244_v2 }
0x235f   :  { %1247 = vrot.lane.b32.xlu0 %v1245_v47, %s1836_s3 }
0x23d1   :  { %v1248_v4 = vpop.permute.xlu0 %1247 }
0x23d2   :  { %1706 = vmatmul.mubr.msk.bf16.vlgmr.msra.gmra.mrb[36].mxu0 %vm171_vm2, %v1248_v4 }
0x23d3   :  { %1721 = vmatprep.mubr.msk.bf16.mxu0 %vm1833_vm1, %v1832_v1  ;;  %1718 = vmatpush3.bf16.msra.mxu0 %v1742_v46 }
0x23d4   :  { %1719 = vmatprep.subr.bf16.mxu0 %v1832_v1 }
0x23d7   :  { %1720 = vmatpush3.bf16.msra.mxu0 %v1743_v45 }
0x24a5   :  { %v1286_v10 = vpop.f32.mrb[36].mxu0 }
0x24a6   :  { %v1292_v5 = vadd.f32 %v1286_v10, %v826_v9  ;;  %v1707_v12 = vpop.f32.mrb[37].mxu0 }
0x24a7   :  { %v1289_v8 = vpop.f32.mrb[38].mxu0 }
0x24a8   :  { %1800 = vtanh.f32 %v1292_v5  ;;  %v1708_v54 = vpop.f32.mrb[39].mxu0 }
0x24b2   :  { %v1801_v13 = vpop.eup %1800 }
0x24b3   :  { %1298 = vrot.lane.b32.xlu1 %v1801_v13, %s1835_s19  ;;  %v1294_v16 = vmul.f32 0.5, %v1801_v13 }
0x24b5   :  { %v1295_v17 = vadd.f32 0.5, %v1294_v16 }
0x24b7   :  { %v1296_v20 = vmul.f32 %v1295_v17, %v1238_v0 }
0x2525   :  { %v1299_v18 = vpop.permute.xlu1 %1298 }
0x2526   :  { %v1301_v19 = vmul.f32 %v1299_v18, %v1295_v17 }
0x2528   :  { %1303 = vrot.lane.b32.xlu0 %v1301_v19, %s1836_s3 }
0x259a   :  { %v1304_v21 = vpop.permute.xlu0 %1303 }
0x259b   :  { %v1306_v22 = vadd.f32 %v1304_v21, %v1296_v20 }
0x259d   :  { %1802 = vtanh.f32 %v1306_v22 }
0x25a7   :  { %v1803_v37 = vpop.eup %1802 }
0x25a8   :  { %1309 = vrot.lane.b32.xlu1 %v1803_v37, %s1835_s19 }
0x261a   :  { %v1310_v23 = vpop.permute.xlu1 %1309 }
0x261b   :  { %v1312_v24 = vmul.f32 %v1310_v23, %v1295_v17 }
0x261d   :  { %v1313_v25 = vpack.c.bf16 %v1312_v24, %v1312_v24 }
0x261f   :  { %1315 = vrot.lane.b32.xlu0 %v1313_v25, %s1836_s3 }
0x2691   :  { %v1316_v52 = vpop.permute.xlu0 %1315 }
0x2692   :  { %1714 = vmatmul.mubr.msk.bf16.vlgmr.msra.gmra.mrb[36].mxu1 %vm171_vm2, %v1316_v52 }
0x2765   :  { %v1354_v27 = vpop.f32.mrb[36].mxu1 }
0x2766   :  { %v1360_v29 = vadd.f32 %v1354_v27, %v829_v26  ;;  %v1715_v30 = vpop.f32.mrb[37].mxu1 }
0x2767   :  { %v1357_v31 = vpop.f32.mrb[38].mxu1 }
0x2768   :  { %1804 = vtanh.f32 %v1360_v29  ;;  %v1716_v11 = vpop.f32.mrb[39].mxu1 }
0x2772   :  { %v1805_v51 = vpop.eup %1804 }
0x2773   :  { %1366 = vrot.lane.b32.xlu1 %v1805_v51, %s1835_s19  ;;  %v1362_v32 = vmul.f32 0.5, %v1805_v51 }
0x2775   :  { %v1363_v34 = vadd.f32 0.5, %v1362_v32 }
0x2777   :  { %v1364_v35 = vmul.f32 %v1363_v34, %v1306_v22 }
0x27e5   :  { %v1367_v56 = vpop.permute.xlu1 %1366 }
0x27e6   :  { %v1369_v15 = vmul.f32 %v1367_v56, %v1363_v34 }
0x27e8   :  { %1371 = vrot.lane.b32.xlu0 %v1369_v15, %s1836_s3 }
0x285a   :  { %v1372_v36 = vpop.permute.xlu0 %1371 }
0x285b   :  { %v1374_v38 = vadd.f32 %v1372_v36, %v1364_v35 }
0x285d   :  { %1806 = vtanh.f32 %v1374_v38 }
0x2867   :  { %v1807_v39 = vpop.eup %1806 }
0x2868   :  { %1377 = vrot.lane.b32.xlu1 %v1807_v39, %s1835_s19 }
0x28da   :  { %v1378_v28 = vpop.permute.xlu1 %1377 }
0x28db   :  { %v1380_v40 = vmul.f32 %v1378_v28, %v1363_v34 }
0x28dd   :  { %v1381_v14 = vpack.c.bf16 %v1380_v40, %v1380_v40 }
0x28df   :  { %1394 = vrot.lane.b32.xlu0 %v1381_v14, %s1836_s3 }
0x2951   :  { %v1395_v33 = vpop.permute.xlu0 %1394 }
0x2952   :  { %1722 = vmatmul.mubr.msk.bf16.vlgmr.msra.gmra.mrb[40].mxu0 %vm171_vm2, %v1395_v33 }
0x2a25   :  { %v1445_v6 = vpop.f32.mrb[40].mxu0 }
0x2a26   :  { %v1446_v1 = vadd.f32 %v1501_v42, %v1445_v6  ;;  %v1723_v43 = vpop.f32.mrb[41].mxu0 }
0x2a27   :  { %v1448_v44 = vpop.f32.mrb[42].mxu0 }
0x2a28   :  { %1451 = vst.msk [vmem:[#allocation2] sm:$0xff] %vm81_vm0, %v1446_v1  ;;  %v1724_v50 = vpop.f32.mrb[43].mxu0 }
0x2a29   :  { %1819 = shalt.err (!%p1816_p4)
}
0x2a2a   :  { %s1820_s8 = scalar_lea.hbm %s2253_s9, 128 }
0x2a2b   :  { %p1821_p5 = scmp.ne.s32.totalorder %s2253_s9, %s1820_s8  ;;  %p1824_p6 = scmp.lt.u32.totalorder %s1820_s8, %s2253_s9 }
0x2a2d   :  { %p1826_p7 = pnand %p1824_p6, %p1821_p5 }
0x2a2f   :  { %1829 = shalt.err (!%p1826_p7)
}
0x2a30   :  { %1461 = dma.vmem_to_hbm [thread:$0]  %s1459_s7, 128, %s2253_s9, [#allocation3]  }
0x2a31   :  { %1830 = dma.done.wait [#allocation3], 128  }
0x2a32   :  { %1831 = vsyncadd [#allocation3], 4294967168 }
0x2a33   :  { %1465 = vsyncpa [#allocation3], 1 }

</bundles_post_ra>
